<compile_context>
chip_gen: v6e
topology: v6e:2x2x1
jax: 0.10.0
libtpu: 0.0.40
codegen_flags: <defaults>
</compile_context>

<pallas_src>
import functools
import numpy as np

import jax
import jax.numpy as jnp
from jax.experimental import pallas as pl
from jax.experimental.pallas import tpu as pltpu

LN_EPS = 1e-5  # nn.LayerNorm default


# ----------------------------- small math helpers ---------------------------

def _layernorm_noaffine(x):
    mu = jnp.mean(x, axis=-1, keepdims=True)
    xc = x - mu
    var = jnp.mean(xc * xc, axis=-1, keepdims=True)
    return xc * jax.lax.rsqrt(var + LN_EPS)


def _layernorm(x, gamma, beta):
    return _layernorm_noaffine(x) * gamma + beta


def _gelu_tanh(x):
    # tanh approximation: lowers to the EUP instead of a VALU-heavy erf poly.
    c = 0.7978845608028654  # sqrt(2/pi)
    return 0.5 * x * (1.0 + jnp.tanh(c * (x + 0.044715 * x * x * x)))


# --------------------------------- kernel -----------------------------------

def _swin_block_kernel(nh, hd, g, nw, n,
                       x_ref, wqkv_ref, bqkv_ref, wp_ref, bp_ref, bias_ref,
                       w1_ref, bb1_ref, w2_ref, bb2_ref, o_ref):
    """g images (g*nw windows, g*nw*n token rows) per grid step."""
    f32, bf16 = jnp.float32, jnp.bfloat16
    x = x_ref[...]                                    # (rows, C) f32
    rows, C = x.shape
    wb = g * nw                                       # windows per step

    # ---- norm1 (affine + q-scale folded into wqkv/bqkv host-side) + QKV ----
    xn = _layernorm_noaffine(x).astype(bf16)
    qkv = (jnp.dot(xn, wqkv_ref[...], preferred_element_type=f32)
           + bqkv_ref[0]).astype(bf16)                # (rows, 3C)

    # ---- head-major batched q/k/v: (nh*wb, n, hd).  Built from static lane
    #      slices + one major-axis concat per operand (safe relayout ops;
    #      avoids 4-D transposes / multi-batch-dim dot_general). ----
    def split_heads(base):
        return jnp.concatenate(
            [qkv[:, base + h * hd: base + (h + 1) * hd].reshape(wb, n, hd)
             for h in range(nh)], axis=0)             # head-major batch
    qb = split_heads(0)
    kb = split_heads(C)
    vb = split_heads(2 * C)

    # ---- ONE batched QK^T / bias+mask / softmax / PV over all heads*windows ----
    s = jnp.einsum("bnd,bmd->bnm", qb, kb,
                   preferred_element_type=f32)        # (nh*wb, n, n)
    if g == 1:
        s = (s.reshape(nh, nw, n, n) + bias_ref[...]).reshape(nh * wb, n, n)
    else:
        s = (s.reshape(nh, g, nw, n, n) + bias_ref[...][:, None]
             ).reshape(nh * wb, n, n)
    s = s - jnp.max(s, axis=-1, keepdims=True)
    e = jnp.exp(s)
    p = (e * pl.reciprocal(jnp.sum(e, axis=-1, keepdims=True), approx=True)
         ).astype(bf16)
    ob = jnp.einsum("bnm,bmd->bnd", p, vb,
                    preferred_element_type=f32)       # (nh*wb, n, hd)

    # ---- heads back to channels-last (rows, C) and output projection ----
    ob = ob.reshape(nh, rows, hd)
    o_heads = jnp.concatenate([ob[h] for h in range(nh)], axis=-1).astype(bf16)
    attn = jnp.dot(o_heads, wp_ref[...], preferred_element_type=f32) + bp_ref[0]

    # ---- residual + norm2 (affine folded into fc1) + MLP + residual ----
    x2 = x + attn
    y = _layernorm_noaffine(x2).astype(bf16)
    h1 = jnp.dot(y, w1_ref[...], preferred_element_type=f32) + bb1_ref[0]
    h1 = _gelu_tanh(h1).astype(bf16)   # GELU kept f32 (v5e EUP has no bf16)
    h2 = jnp.dot(h1, w2_ref[...], preferred_element_type=f32) + bb2_ref[0]
    o_ref[...] = (x2 + h2).astype(o_ref.dtype)


# --------------------------------- glue -------------------------------------

def window_partition(x, ws):
    B, H, W, C = x.shape
    x = x.reshape(B, H // ws, ws, W // ws, ws, C)
    return x.transpose(0, 1, 3, 2, 4, 5).reshape(-1, ws, ws, C)


def window_reverse(windows, ws, H, W):
    B = windows.shape[0] // (H * W // ws // ws)
    x = windows.reshape(B, H // ws, W // ws, ws, ws, -1)
    return x.transpose(0, 1, 3, 2, 4, 5).reshape(B, H, W, -1)


def _pick_images_per_step(B, L, C, Ch, nh, N, vmem_budget=8 * 1024 * 1024):
    """Images per grid step: largest g dividing B such that the live f32
    intermediates fit a VMEM budget, ROWS=g*L obeys the sublane rule when the
    grid has >1 step, and the grid keeps >=2 steps (v7x megacore)."""
    per_row = 4 * (10 * C + 2 * Ch) + 8 * nh * N      # rough live bytes/row
    best = None
    for g in range(1, B + 1):
        if B % g:
            continue
        rows, steps = g * L, B // g
        if steps > 1 and rows % 8:
            continue                                   # (8, .) sublane rule
        if rows * per_row > vmem_budget:
            continue
        if B >= 2 and steps < 2:
            continue                                   # keep both TCs busy on v7x
        best = g
    return best if best is not None else B             # full array: always legal


def swin_block_forward(enc, params, cfg):
    H, W = cfg["input_resolution"]
    ws = cfg["window_size"]
    shift = cfg["shift_size"]
    nh = cfg["num_heads"]
    B, L, C = enc.shape
    hd = C // nh
    N = ws * ws
    nW = (H // ws) * (W // ws)
    B_ = B * nW
    scale = hd ** -0.5
    Ch = params["w1"].shape[1]
    f32, bf16 = jnp.float32, jnp.bfloat16

    # ---- host-side constant folding (LN affines + qk scale into weights),
    #      weights / bias+mask pre-cast to bf16 ----
    g1, b1 = params["g1"][0], params["b1"][0]
    g2, b2 = params["g2"][0], params["b2"][0]
    wqkv = jnp.concatenate([params["wq"], params["wkv"]], axis=1)     # (C, 3C)
    bqkv = jnp.concatenate([params["bq"], params["bkv"]], axis=1)     # (1, 3C)
    col_scale = jnp.concatenate([jnp.full((C,), scale, f32),
                                 jnp.ones((2 * C,), f32)])
    wqkv_f = (g1[:, None] * wqkv) * col_scale[None, :]
    bqkv_f = (b1[None, :] @ wqkv + bqkv) * col_scale[None, :]
    w1_f = g2[:, None] * params["w1"]
    bb1_f = b2[None, :] @ params["w1"] + params["bb1"]

    wqkv_bf = wqkv_f.astype(bf16)
    wproj_bf = params["wproj"].astype(bf16)
    w1_bf = w1_f.astype(bf16)
    w2_bf = params["w2"].astype(bf16)
    # combined rel-pos bias + shift mask, untiled: (nh, nW, N, N) bf16
    bias_bf = (params["rel_bias"][:, None, :, :] +
               params["attn_mask"][None, :, :, :]).astype(bf16)

    g = _pick_images_per_step(B, L, C, Ch, nh, N)
    WB = nW * g
    ROWS = WB * N
    assert B_ % WB == 0 and (ROWS % 8 == 0 or B_ // WB == 1)

    # ---- pre-attention token permutations (per-token norm/MLP/residual all
    #      commute with roll / window partition, so the shortcut path is the
    #      windowed un-normalized input itself) ----
    x = enc.reshape(B, H, W, C)
    if shift > 0:
        x = jnp.roll(x, (-shift, -shift), axis=(1, 2))
    xw = window_partition(x, ws).reshape(B_ * N, C)   # token rows, lane dim C

    kernel = functools.partial(_swin_block_kernel, nh, hd, g, nW, N)
    c2 = lambda i: (0, 0)          # constant (weight) blocks: fetched once
    c4 = lambda i: (0, 0, 0, 0)

    out_flat = pl.pallas_call(
        kernel,
        out_shape=jax.ShapeDtypeStruct((B_ * N, C), enc.dtype),
        grid_spec=pltpu.PrefetchScalarGridSpec(
            num_scalar_prefetch=0,
            grid=(B_ // WB,),
            in_specs=[
                pl.BlockSpec((ROWS, C), lambda i: (i, 0)),   # windowed tokens
                pl.BlockSpec((C, 3 * C), c2),                # Wqkv (bf16, folded)
                pl.BlockSpec((1, 3 * C), c2),                # bqkv (f32, folded)
                pl.BlockSpec((C, C), c2),                    # Wproj (bf16)
                pl.BlockSpec((1, C), c2),                    # bproj
                pl.BlockSpec((nh, nW, N, N), c4),            # rel bias + mask (bf16)
                pl.BlockSpec((C, Ch), c2),                   # fc1 W (bf16, folded)
                pl.BlockSpec((1, Ch), c2),                   # fc1 b (folded)
                pl.BlockSpec((Ch, C), c2),                   # fc2 W (bf16)
                pl.BlockSpec((1, C), c2),                    # fc2 b
            ],
            out_specs=pl.BlockSpec((ROWS, C), lambda i: (i, 0)),
        ),
        compiler_params=pltpu.CompilerParams(
            dimension_semantics=("parallel",),
            vmem_limit_bytes=64 * 1024 * 1024),
        input_output_aliases={0: 0},                         # write in place
    )(xw, wqkv_bf, bqkv_f, wproj_bf, params["bproj"], bias_bf,
      w1_bf, bb1_f, w2_bf, params["bb2"])

    # ---- undo window partition / cyclic shift ----
    aw = out_flat.reshape(B_, ws, ws, C)
    xs = window_reverse(aw, ws, H, W)
    if shift > 0:
        xs = jnp.roll(xs, (shift, shift), axis=(1, 2))
    return xs.reshape(B, L, C)


# ------------------------- pure-JAX reference (check) ------------------------

def swin_block_reference(enc, params, cfg):
    H, W = cfg["input_resolution"]
    ws, shift, nh = cfg["window_size"], cfg["shift_size"], cfg["num_heads"]
    B, L, C = enc.shape
    hd = C // nh
    N = ws * ws
    nW = (H // ws) * (W // ws)
    scale = hd ** -0.5

    xn = _layernorm(enc, params["g1"][0], params["b1"][0])
    x = xn.reshape(B, H, W, C)
    if shift > 0:
        x = jnp.roll(x, (-shift, -shift), axis=(1, 2))
    xw = window_partition(x, ws).reshape(-1, N, C)
    B_ = xw.shape[0]

    q = xw @ params["wq"] + params["bq"][0]
    kv = xw @ params["wkv"] + params["bkv"][0]
    k, v = kv[..., :C], kv[..., C:]
    q = q.reshape(B_, N, nh, hd).transpose(0, 2, 1, 3) * scale
    k = k.reshape(B_, N, nh, hd).transpose(0, 2, 1, 3)
    v = v.reshape(B_, N, nh, hd).transpose(0, 2, 1, 3)
    attn = jnp.einsum("bhnd,bhmd->bhnm", q, k)
    attn = attn + params["rel_bias"][None]
    attn = (attn.reshape(B_ // nW, nW, nh, N, N)
            + params["attn_mask"][None, :, None]).reshape(B_, nh, N, N)
    attn = jax.nn.softmax(attn, axis=-1)
    o = jnp.einsum("bhnm,bhmd->bhnd", attn, v)
    o = o.transpose(0, 2, 1, 3).reshape(B_, N, C)
    o = o @ params["wproj"] + params["bproj"][0]

    xs = window_reverse(o.reshape(-1, ws, ws, C), ws, H, W)
    if shift > 0:
        xs = jnp.roll(xs, (shift, shift), axis=(1, 2))
    x = enc + xs.reshape(B, L, C)

    y = _layernorm(x, params["g2"][0], params["b2"][0])
    h = y @ params["w1"] + params["bb1"][0]
    h = 0.5 * h * (1.0 + jax.scipy.special.erf(h * 0.7071067811865476))
    h = h @ params["w2"] + params["bb2"][0]
    return x + h


# ----------------------------------- main ------------------------------------

if __name__ == "__main__":
    # small-but-consistent Swin config: dim=32, heads=4, 8x8 resolution,
    # window 4, shift 2 (SW-MSA path, so the attention mask is exercised),
    # crs=False => mlp_hidden_dim = dim, all drop rates = 0.
    B, H, W, C = 2, 8, 8, 32
    nh, ws, shift = 4, 4, 2
    L, N = H * W, ws * ws
    nW = (H // ws) * (W // ws)

    key = jax.random.PRNGKey(0)
    ks = jax.random.split(key, 20)

    def nrm(k, shape, std=0.05):
        return jax.random.normal(k, shape, jnp.float32) * std

    enc = jax.random.normal(ks[0], (B, L, C), jnp.float32)

    # relative position bias table + index (matches the torch buffer logic)
    rpb_table = nrm(ks[1], ((2 * ws - 1) * (2 * ws - 1), nh), 0.02)
    coords = np.stack(np.meshgrid(np.arange(ws), np.arange(ws), indexing="ij"))
    cf = coords.reshape(2, -1)
    rel = (cf[:, :, None] - cf[:, None, :]).transpose(1, 2, 0).astype(np.int64)
    rel[:, :, 0] += ws - 1
    rel[:, :, 1] += ws - 1
    rel[:, :, 0] *= 2 * ws - 1
    rel_index = rel.sum(-1)                                   # (N, N)
    rel_bias = rpb_table[rel_index.reshape(-1)].reshape(N, N, nh)
    rel_bias = jnp.asarray(rel_bias).transpose(2, 0, 1)       # (nh, N, N)

    # shifted-window attention mask (nW, N, N) with {0, -100}
    if shift > 0:
        img_mask = np.zeros((1, H, W, 1), np.float32)
        cnt = 0
        for hs in (slice(0, H - ws), slice(H - ws, H - shift), slice(H - shift, H)):
            for wsl in (slice(0, W - ws), slice(W - ws, W - shift), slice(W - shift, W)):
                img_mask[:, hs, wsl, :] = cnt
                cnt += 1
        mw = np.asarray(window_partition(jnp.asarray(img_mask), ws)).reshape(-1, N)
        am = mw[:, None, :] - mw[:, :, None]
        attn_mask = np.where(am != 0, -100.0, 0.0).astype(np.float32)
    else:
        attn_mask = np.zeros((nW, N, N), np.float32)
    attn_mask = jnp.asarray(attn_mask)

    params = dict(
        g1=1.0 + nrm(ks[2], (1, C), 0.02), b1=nrm(ks[3], (1, C), 0.02),
        wq=nrm(ks[4], (C, C)),      bq=nrm(ks[5], (1, C), 0.02),
        wkv=nrm(ks[6], (C, 2 * C)), bkv=nrm(ks[7], (1, 2 * C), 0.02),
        wproj=nrm(ks[8], (C, C)),   bproj=nrm(ks[9], (1, C), 0.02),
        g2=1.0 + nrm(ks[10], (1, C), 0.02), b2=nrm(ks[11], (1, C), 0.02),
        w1=nrm(ks[12], (C, C)),     bb1=nrm(ks[13], (1, C), 0.02),
        w2=nrm(ks[14], (C, C)),     bb2=nrm(ks[15], (1, C), 0.02),
        rel_bias=rel_bias, attn_mask=attn_mask,
    )
    cfg = dict(input_resolution=(H, W), window_size=ws, shift_size=shift,
               num_heads=nh)

    fwd = jax.jit(functools.partial(swin_block_forward, cfg=cfg))
    out = jax.block_until_ready(fwd(enc, params))
    ref = jax.block_until_ready(swin_block_reference(enc, params, cfg))
    # tolerance widened vs f32-only: kernel uses bf16 MXU operands / bf16
    # folded weights (f32 accumulation), tanh-GELU and an approx reciprocal.
    np.testing.assert_allclose(np.asarray(out), np.asarray(ref),
                               atol=2e-2, rtol=1e-2)
    print("KERNEL_OK")
</pallas_src>

<mosaic_0001>
module attributes {stable_mosaic.version = 11 : i64} {
  func.func @_swin_block_kernel(%arg0: i32, %arg1: memref<64x32xf32, #tpu.memory_space<vmem>>, %arg2: memref<32x96xbf16, #tpu.memory_space<vmem>>, %arg3: memref<1x96xf32, #tpu.memory_space<vmem>>, %arg4: memref<32x32xbf16, #tpu.memory_space<vmem>>, %arg5: memref<1x32xf32, #tpu.memory_space<vmem>>, %arg6: memref<4x4x16x16xbf16, #tpu.memory_space<vmem>>, %arg7: memref<32x32xbf16, #tpu.memory_space<vmem>>, %arg8: memref<1x32xf32, #tpu.memory_space<vmem>>, %arg9: memref<32x32xbf16, #tpu.memory_space<vmem>>, %arg10: memref<1x32xf32, #tpu.memory_space<vmem>>, %arg11: memref<64x32xf32, #tpu.memory_space<vmem>>) attributes {dimension_semantics = [#tpu.dimension_semantics<parallel>], iteration_bounds = array<i64: 2>, scalar_prefetch = 0 : i64, scratch_operands = 0 : i64, tpu.core_type = #tpu.core_type<tc>, window_params = [{transform_indices = @transform_0, window_bounds = array<i64: 64, 32>}, {pipeline_mode = #tpu.pipeline_mode<synchronous>, transform_indices = @transform_1, window_bounds = array<i64: 32, 96>}, {pipeline_mode = #tpu.pipeline_mode<synchronous>, transform_indices = @transform_2, window_bounds = array<i64: 1, 96>}, {pipeline_mode = #tpu.pipeline_mode<synchronous>, transform_indices = @transform_3, window_bounds = array<i64: 32, 32>}, {pipeline_mode = #tpu.pipeline_mode<synchronous>, transform_indices = @transform_4, window_bounds = array<i64: 1, 32>}, {pipeline_mode = #tpu.pipeline_mode<synchronous>, transform_indices = @transform_5, window_bounds = array<i64: 4, 4, 16, 16>}, {pipeline_mode = #tpu.pipeline_mode<synchronous>, transform_indices = @transform_6, window_bounds = array<i64: 32, 32>}, {pipeline_mode = #tpu.pipeline_mode<synchronous>, transform_indices = @transform_7, window_bounds = array<i64: 1, 32>}, {pipeline_mode = #tpu.pipeline_mode<synchronous>, transform_indices = @transform_8, window_bounds = array<i64: 32, 32>}, {pipeline_mode = #tpu.pipeline_mode<synchronous>, transform_indices = @transform_9, window_bounds = array<i64: 1, 32>}, {transform_indices = @transform_10, window_bounds = array<i64: 64, 32>}]} {
    %c0 = arith.constant 0 : index
    %c0_0 = arith.constant 0 : index
    %0 = vector.load %arg1[%c0, %c0_0] : memref<64x32xf32, #tpu.memory_space<vmem>>, vector<64x32xf32>
    %cst = arith.constant dense<0.000000e+00> : vector<64xf32>
    %1 = vector.multi_reduction <add>, %0, %cst [1] : vector<64x32xf32> to vector<64xf32>
    %2 = vector.shape_cast %1 : vector<64xf32> to vector<64x1xf32>
    %cst_1 = arith.constant 3.200000e+01 : f32
    %3 = vector.broadcast %cst_1 : f32 to vector<64x1xf32>
    %4 = arith.divf %2, %3 : vector<64x1xf32>
    %5 = vector.broadcast %4 : vector<64x1xf32> to vector<64x32xf32>
    %6 = arith.subf %0, %5 : vector<64x32xf32>
    %7 = arith.mulf %6, %6 : vector<64x32xf32>
    %cst_2 = arith.constant dense<0.000000e+00> : vector<64xf32>
    %8 = vector.multi_reduction <add>, %7, %cst_2 [1] : vector<64x32xf32> to vector<64xf32>
    %9 = vector.shape_cast %8 : vector<64xf32> to vector<64x1xf32>
    %cst_3 = arith.constant 3.200000e+01 : f32
    %10 = vector.broadcast %cst_3 : f32 to vector<64x1xf32>
    %11 = arith.divf %9, %10 : vector<64x1xf32>
    %cst_4 = arith.constant 9.99999974E-6 : f32
    %12 = vector.broadcast %cst_4 : f32 to vector<64x1xf32>
    %13 = arith.addf %11, %12 : vector<64x1xf32>
    %14 = math.rsqrt %13 : vector<64x1xf32>
    %15 = vector.broadcast %14 : vector<64x1xf32> to vector<64x32xf32>
    %16 = arith.mulf %6, %15 : vector<64x32xf32>
    %17 = arith.truncf %16 : vector<64x32xf32> to vector<64x32xbf16>
    %c0_5 = arith.constant 0 : index
    %c0_6 = arith.constant 0 : index
    %18 = vector.load %arg2[%c0_5, %c0_6] : memref<32x96xbf16, #tpu.memory_space<vmem>>, vector<32x96xbf16>
    %cst_7 = arith.constant dense<0.000000e+00> : vector<64x96xf32>
    %19 = tpu.matmul %17, %18, %cst_7 {dimension_numbers = #tpu.dot_dimension_numbers<[1], [0], [0], [1], [0, 0, 1, 1], [], []>} : vector<64x32xbf16>, vector<32x96xbf16>, vector<64x96xf32> -> vector<64x96xf32>
    %c0_8 = arith.constant 0 : index
    %c0_9 = arith.constant 0 : index
    %20 = vector.load %arg3[%c0_8, %c0_9] : memref<1x96xf32, #tpu.memory_space<vmem>>, vector<1x96xf32>
    %21 = vector.shape_cast %20 : vector<1x96xf32> to vector<96xf32>
    %22 = vector.shape_cast %21 : vector<96xf32> to vector<1x96xf32>
    %23 = vector.broadcast %22 : vector<1x96xf32> to vector<64x96xf32>
    %24 = arith.addf %19, %23 : vector<64x96xf32>
    %25 = arith.truncf %24 : vector<64x96xf32> to vector<64x96xbf16>
    %26 = vector.extract_strided_slice %25 {offsets = [0, 0], sizes = [64, 8], strides = [1, 1]} : vector<64x96xbf16> to vector<64x8xbf16>
    %27 = vector.shape_cast %26 : vector<64x8xbf16> to vector<4x16x8xbf16>
    %28 = vector.extract_strided_slice %25 {offsets = [0, 8], sizes = [64, 8], strides = [1, 1]} : vector<64x96xbf16> to vector<64x8xbf16>
    %29 = vector.shape_cast %28 : vector<64x8xbf16> to vector<4x16x8xbf16>
    %30 = vector.extract_strided_slice %25 {offsets = [0, 16], sizes = [64, 8], strides = [1, 1]} : vector<64x96xbf16> to vector<64x8xbf16>
    %31 = vector.shape_cast %30 : vector<64x8xbf16> to vector<4x16x8xbf16>
    %32 = vector.extract_strided_slice %25 {offsets = [0, 24], sizes = [64, 8], strides = [1, 1]} : vector<64x96xbf16> to vector<64x8xbf16>
    %33 = vector.shape_cast %32 : vector<64x8xbf16> to vector<4x16x8xbf16>
    %34 = tpu.concatenate %27, %29, %31, %33 in 0 : vector<4x16x8xbf16>, vector<4x16x8xbf16>, vector<4x16x8xbf16>, vector<4x16x8xbf16> -> vector<16x16x8xbf16>
    %35 = vector.extract_strided_slice %25 {offsets = [0, 32], sizes = [64, 8], strides = [1, 1]} : vector<64x96xbf16> to vector<64x8xbf16>
    %36 = vector.shape_cast %35 : vector<64x8xbf16> to vector<4x16x8xbf16>
    %37 = vector.extract_strided_slice %25 {offsets = [0, 40], sizes = [64, 8], strides = [1, 1]} : vector<64x96xbf16> to vector<64x8xbf16>
    %38 = vector.shape_cast %37 : vector<64x8xbf16> to vector<4x16x8xbf16>
    %39 = vector.extract_strided_slice %25 {offsets = [0, 48], sizes = [64, 8], strides = [1, 1]} : vector<64x96xbf16> to vector<64x8xbf16>
    %40 = vector.shape_cast %39 : vector<64x8xbf16> to vector<4x16x8xbf16>
    %41 = vector.extract_strided_slice %25 {offsets = [0, 56], sizes = [64, 8], strides = [1, 1]} : vector<64x96xbf16> to vector<64x8xbf16>
    %42 = vector.shape_cast %41 : vector<64x8xbf16> to vector<4x16x8xbf16>
    %43 = tpu.concatenate %36, %38, %40, %42 in 0 : vector<4x16x8xbf16>, vector<4x16x8xbf16>, vector<4x16x8xbf16>, vector<4x16x8xbf16> -> vector<16x16x8xbf16>
    %44 = vector.extract_strided_slice %25 {offsets = [0, 64], sizes = [64, 8], strides = [1, 1]} : vector<64x96xbf16> to vector<64x8xbf16>
    %45 = vector.shape_cast %44 : vector<64x8xbf16> to vector<4x16x8xbf16>
    %46 = vector.extract_strided_slice %25 {offsets = [0, 72], sizes = [64, 8], strides = [1, 1]} : vector<64x96xbf16> to vector<64x8xbf16>
    %47 = vector.shape_cast %46 : vector<64x8xbf16> to vector<4x16x8xbf16>
    %48 = vector.extract_strided_slice %25 {offsets = [0, 80], sizes = [64, 8], strides = [1, 1]} : vector<64x96xbf16> to vector<64x8xbf16>
    %49 = vector.shape_cast %48 : vector<64x8xbf16> to vector<4x16x8xbf16>
    %50 = vector.extract_strided_slice %25 {offsets = [0, 88], sizes = [64, 8], strides = [1, 1]} : vector<64x96xbf16> to vector<64x8xbf16>
    %51 = vector.shape_cast %50 : vector<64x8xbf16> to vector<4x16x8xbf16>
    %52 = tpu.concatenate %45, %47, %49, %51 in 0 : vector<4x16x8xbf16>, vector<4x16x8xbf16>, vector<4x16x8xbf16>, vector<4x16x8xbf16> -> vector<16x16x8xbf16>
    "tpu.trace_start"() <{level = 10 : i32, message = "bnd,bmd->bnm"}> : () -> ()
    %cst_10 = arith.constant dense<0.000000e+00> : vector<16x16x16xf32>
    %53 = tpu.matmul %34, %43, %cst_10 {dimension_numbers = #tpu.dot_dimension_numbers<[2], [2], [1], [1], [0, 0, 0, 1, 1, 1], [0], [0]>} : vector<16x16x8xbf16>, vector<16x16x8xbf16>, vector<16x16x16xf32> -> vector<16x16x16xf32>
    "tpu.trace_stop"() : () -> ()
    %54 = vector.shape_cast %53 : vector<16x16x16xf32> to vector<4x4x16x16xf32>
    %c0_11 = arith.constant 0 : index
    %c0_12 = arith.constant 0 : index
    %c0_13 = arith.constant 0 : index
    %c0_14 = arith.constant 0 : index
    %55 = vector.load %arg6[%c0_11, %c0_12, %c0_13, %c0_14] : memref<4x4x16x16xbf16, #tpu.memory_space<vmem>>, vector<4x4x16x16xbf16>
    %56 = arith.extf %55 : vector<4x4x16x16xbf16> to vector<4x4x16x16xf32>
    %57 = arith.addf %54, %56 : vector<4x4x16x16xf32>
    %58 = vector.shape_cast %57 : vector<4x4x16x16xf32> to vector<16x16x16xf32>
    %cst_15 = arith.constant dense<0xFF800000> : vector<16x16xf32>
    %59 = vector.multi_reduction <maximumf>, %58, %cst_15 [2] : vector<16x16x16xf32> to vector<16x16xf32>
    %60 = vector.shape_cast %59 : vector<16x16xf32> to vector<16x16x1xf32>
    %61 = vector.broadcast %60 : vector<16x16x1xf32> to vector<16x16x16xf32>
    %62 = arith.subf %58, %61 : vector<16x16x16xf32>
    %63 = math.exp %62 : vector<16x16x16xf32>
    %cst_16 = arith.constant dense<0.000000e+00> : vector<16x16xf32>
    %64 = vector.multi_reduction <add>, %63, %cst_16 [2] : vector<16x16x16xf32> to vector<16x16xf32>
    %65 = vector.shape_cast %64 : vector<16x16xf32> to vector<16x16x1xf32>
    %66 = tpu.reciprocal %65 {approx = true} : vector<16x16x1xf32> -> vector<16x16x1xf32>
    %67 = vector.broadcast %66 : vector<16x16x1xf32> to vector<16x16x16xf32>
    %68 = arith.mulf %63, %67 : vector<16x16x16xf32>
    %69 = arith.truncf %68 : vector<16x16x16xf32> to vector<16x16x16xbf16>
    "tpu.trace_start"() <{level = 10 : i32, message = "bnm,bmd->bnd"}> : () -> ()
    %cst_17 = arith.constant dense<0.000000e+00> : vector<16x16x8xf32>
    %70 = tpu.matmul %69, %52, %cst_17 {dimension_numbers = #tpu.dot_dimension_numbers<[2], [1], [1], [2], [0, 0, 0, 1, 1, 2], [0], [0]>} : vector<16x16x16xbf16>, vector<16x16x8xbf16>, vector<16x16x8xf32> -> vector<16x16x8xf32>
    "tpu.trace_stop"() : () -> ()
    %71 = vector.shape_cast %70 : vector<16x16x8xf32> to vector<4x64x8xf32>
    %72 = vector.extract_strided_slice %71 {offsets = [0, 0, 0], sizes = [1, 64, 8], strides = [1, 1, 1]} : vector<4x64x8xf32> to vector<1x64x8xf32>
    %73 = vector.shape_cast %72 : vector<1x64x8xf32> to vector<64x8xf32>
    %74 = vector.extract_strided_slice %71 {offsets = [1, 0, 0], sizes = [1, 64, 8], strides = [1, 1, 1]} : vector<4x64x8xf32> to vector<1x64x8xf32>
    %75 = vector.shape_cast %74 : vector<1x64x8xf32> to vector<64x8xf32>
    %76 = vector.extract_strided_slice %71 {offsets = [2, 0, 0], sizes = [1, 64, 8], strides = [1, 1, 1]} : vector<4x64x8xf32> to vector<1x64x8xf32>
    %77 = vector.shape_cast %76 : vector<1x64x8xf32> to vector<64x8xf32>
    %78 = vector.extract_strided_slice %71 {offsets = [3, 0, 0], sizes = [1, 64, 8], strides = [1, 1, 1]} : vector<4x64x8xf32> to vector<1x64x8xf32>
    %79 = vector.shape_cast %78 : vector<1x64x8xf32> to vector<64x8xf32>
    %80 = tpu.concatenate %73, %75, %77, %79 in 1 : vector<64x8xf32>, vector<64x8xf32>, vector<64x8xf32>, vector<64x8xf32> -> vector<64x32xf32>
    %81 = arith.truncf %80 : vector<64x32xf32> to vector<64x32xbf16>
    %c0_18 = arith.constant 0 : index
    %c0_19 = arith.constant 0 : index
    %82 = vector.load %arg4[%c0_18, %c0_19] : memref<32x32xbf16, #tpu.memory_space<vmem>>, vector<32x32xbf16>
    %cst_20 = arith.constant dense<0.000000e+00> : vector<64x32xf32>
    %83 = tpu.matmul %81, %82, %cst_20 {dimension_numbers = #tpu.dot_dimension_numbers<[1], [0], [0], [1], [0, 0, 1, 1], [], []>} : vector<64x32xbf16>, vector<32x32xbf16>, vector<64x32xf32> -> vector<64x32xf32>
    %c0_21 = arith.constant 0 : index
    %c0_22 = arith.constant 0 : index
    %84 = vector.load %arg5[%c0_21, %c0_22] : memref<1x32xf32, #tpu.memory_space<vmem>>, vector<1x32xf32>
    %85 = vector.shape_cast %84 : vector<1x32xf32> to vector<32xf32>
    %86 = vector.shape_cast %85 : vector<32xf32> to vector<1x32xf32>
    %87 = vector.broadcast %86 : vector<1x32xf32> to vector<64x32xf32>
    %88 = arith.addf %83, %87 : vector<64x32xf32>
    %89 = arith.addf %0, %88 : vector<64x32xf32>
    %cst_23 = arith.constant dense<0.000000e+00> : vector<64xf32>
    %90 = vector.multi_reduction <add>, %89, %cst_23 [1] : vector<64x32xf32> to vector<64xf32>
    %91 = vector.shape_cast %90 : vector<64xf32> to vector<64x1xf32>
    %cst_24 = arith.constant 3.200000e+01 : f32
    %92 = vector.broadcast %cst_24 : f32 to vector<64x1xf32>
    %93 = arith.divf %91, %92 : vector<64x1xf32>
    %94 = vector.broadcast %93 : vector<64x1xf32> to vector<64x32xf32>
    %95 = arith.subf %89, %94 : vector<64x32xf32>
    %96 = arith.mulf %95, %95 : vector<64x32xf32>
    %cst_25 = arith.constant dense<0.000000e+00> : vector<64xf32>
    %97 = vector.multi_reduction <add>, %96, %cst_25 [1] : vector<64x32xf32> to vector<64xf32>
    %98 = vector.shape_cast %97 : vector<64xf32> to vector<64x1xf32>
    %cst_26 = arith.constant 3.200000e+01 : f32
    %99 = vector.broadcast %cst_26 : f32 to vector<64x1xf32>
    %100 = arith.divf %98, %99 : vector<64x1xf32>
    %cst_27 = arith.constant 9.99999974E-6 : f32
    %101 = vector.broadcast %cst_27 : f32 to vector<64x1xf32>
    %102 = arith.addf %100, %101 : vector<64x1xf32>
    %103 = math.rsqrt %102 : vector<64x1xf32>
    %104 = vector.broadcast %103 : vector<64x1xf32> to vector<64x32xf32>
    %105 = arith.mulf %95, %104 : vector<64x32xf32>
    %106 = arith.truncf %105 : vector<64x32xf32> to vector<64x32xbf16>
    %c0_28 = arith.constant 0 : index
    %c0_29 = arith.constant 0 : index
    %107 = vector.load %arg7[%c0_28, %c0_29] : memref<32x32xbf16, #tpu.memory_space<vmem>>, vector<32x32xbf16>
    %cst_30 = arith.constant dense<0.000000e+00> : vector<64x32xf32>
    %108 = tpu.matmul %106, %107, %cst_30 {dimension_numbers = #tpu.dot_dimension_numbers<[1], [0], [0], [1], [0, 0, 1, 1], [], []>} : vector<64x32xbf16>, vector<32x32xbf16>, vector<64x32xf32> -> vector<64x32xf32>
    %c0_31 = arith.constant 0 : index
    %c0_32 = arith.constant 0 : index
    %109 = vector.load %arg8[%c0_31, %c0_32] : memref<1x32xf32, #tpu.memory_space<vmem>>, vector<1x32xf32>
    %110 = vector.shape_cast %109 : vector<1x32xf32> to vector<32xf32>
    %111 = vector.shape_cast %110 : vector<32xf32> to vector<1x32xf32>
    %112 = vector.broadcast %111 : vector<1x32xf32> to vector<64x32xf32>
    %113 = arith.addf %108, %112 : vector<64x32xf32>
    %cst_33 = arith.constant 5.000000e-01 : f32
    %114 = vector.broadcast %cst_33 : f32 to vector<64x32xf32>
    %115 = arith.mulf %114, %113 : vector<64x32xf32>
    %cst_34 = arith.constant 4.471500e-02 : f32
    %116 = vector.broadcast %cst_34 : f32 to vector<64x32xf32>
    %117 = arith.mulf %116, %113 : vector<64x32xf32>
    %118 = arith.mulf %117, %113 : vector<64x32xf32>
    %119 = arith.mulf %118, %113 : vector<64x32xf32>
    %120 = arith.addf %113, %119 : vector<64x32xf32>
    %cst_35 = arith.constant 0.797884583 : f32
    %121 = vector.broadcast %cst_35 : f32 to vector<64x32xf32>
    %122 = arith.mulf %121, %120 : vector<64x32xf32>
    %123 = math.tanh %122 : vector<64x32xf32>
    %cst_36 = arith.constant 1.000000e+00 : f32
    %124 = vector.broadcast %cst_36 : f32 to vector<64x32xf32>
    %125 = arith.addf %124, %123 : vector<64x32xf32>
    %126 = arith.mulf %115, %125 : vector<64x32xf32>
    %127 = arith.truncf %126 : vector<64x32xf32> to vector<64x32xbf16>
    %c0_37 = arith.constant 0 : index
    %c0_38 = arith.constant 0 : index
    %128 = vector.load %arg9[%c0_37, %c0_38] : memref<32x32xbf16, #tpu.memory_space<vmem>>, vector<32x32xbf16>
    %cst_39 = arith.constant dense<0.000000e+00> : vector<64x32xf32>
    %129 = tpu.matmul %127, %128, %cst_39 {dimension_numbers = #tpu.dot_dimension_numbers<[1], [0], [0], [1], [0, 0, 1, 1], [], []>} : vector<64x32xbf16>, vector<32x32xbf16>, vector<64x32xf32> -> vector<64x32xf32>
    %c0_40 = arith.constant 0 : index
    %c0_41 = arith.constant 0 : index
    %130 = vector.load %arg10[%c0_40, %c0_41] : memref<1x32xf32, #tpu.memory_space<vmem>>, vector<1x32xf32>
    %131 = vector.shape_cast %130 : vector<1x32xf32> to vector<32xf32>
    %132 = vector.shape_cast %131 : vector<32xf32> to vector<1x32xf32>
    %133 = vector.broadcast %132 : vector<1x32xf32> to vector<64x32xf32>
    %134 = arith.addf %129, %133 : vector<64x32xf32>
    %135 = arith.addf %89, %134 : vector<64x32xf32>
    %c0_42 = arith.constant 0 : index
    %c0_43 = arith.constant 0 : index
    %136 = vector.load %arg11[%c0_42, %c0_43] : memref<64x32xf32, #tpu.memory_space<vmem>>, vector<64x32xf32>
    tpu.vector_store %arg11[%c0_42, %c0_43], %135 {strides = array<i32>} : memref<64x32xf32, #tpu.memory_space<vmem>>, vector<64x32xf32>,
    return
  }
  func.func @transform_0(%arg0: i32) -> (i32, i32) {
    %c0_i32 = arith.constant 0 : i32
    %c0_i32_0 = arith.constant 0 : i32
    return %arg0, %c0_i32 : i32, i32
  }
  func.func @transform_1(%arg0: i32) -> (i32, i32) {
    %c0_i32 = arith.constant 0 : i32
    %c0_i32_0 = arith.constant 0 : i32
    %c0_i32_1 = arith.constant 0 : i32
    return %c0_i32, %c0_i32_0 : i32, i32
  }
  func.func @transform_2(%arg0: i32) -> (i32, i32) {
    %c0_i32 = arith.constant 0 : i32
    %c0_i32_0 = arith.constant 0 : i32
    %c0_i32_1 = arith.constant 0 : i32
    return %c0_i32, %c0_i32_0 : i32, i32
  }
  func.func @transform_3(%arg0: i32) -> (i32, i32) {
    %c0_i32 = arith.constant 0 : i32
    %c0_i32_0 = arith.constant 0 : i32
    %c0_i32_1 = arith.constant 0 : i32
    return %c0_i32, %c0_i32_0 : i32, i32
  }
  func.func @transform_4(%arg0: i32) -> (i32, i32) {
    %c0_i32 = arith.constant 0 : i32
    %c0_i32_0 = arith.constant 0 : i32
    %c0_i32_1 = arith.constant 0 : i32
    return %c0_i32, %c0_i32_0 : i32, i32
  }
  func.func @transform_5(%arg0: i32) -> (i32, i32, i32, i32) {
    %c0_i32 = arith.constant 0 : i32
    %c0_i32_0 = arith.constant 0 : i32
    %c0_i32_1 = arith.constant 0 : i32
    %c0_i32_2 = arith.constant 0 : i32
    %c0_i32_3 = arith.constant 0 : i32
    return %c0_i32, %c0_i32_0, %c0_i32_1, %c0_i32_2 : i32, i32, i32, i32
  }
  func.func @transform_6(%arg0: i32) -> (i32, i32) {
    %c0_i32 = arith.constant 0 : i32
    %c0_i32_0 = arith.constant 0 : i32
    %c0_i32_1 = arith.constant 0 : i32
    return %c0_i32, %c0_i32_0 : i32, i32
  }
  func.func @transform_7(%arg0: i32) -> (i32, i32) {
    %c0_i32 = arith.constant 0 : i32
    %c0_i32_0 = arith.constant 0 : i32
    %c0_i32_1 = arith.constant 0 : i32
    return %c0_i32, %c0_i32_0 : i32, i32
  }
  func.func @transform_8(%arg0: i32) -> (i32, i32) {
    %c0_i32 = arith.constant 0 : i32
    %c0_i32_0 = arith.constant 0 : i32
    %c0_i32_1 = arith.constant 0 : i32
    return %c0_i32, %c0_i32_0 : i32, i32
  }
  func.func @transform_9(%arg0: i32) -> (i32, i32) {
    %c0_i32 = arith.constant 0 : i32
    %c0_i32_0 = arith.constant 0 : i32
    %c0_i32_1 = arith.constant 0 : i32
    return %c0_i32, %c0_i32_0 : i32, i32
  }
  func.func @transform_10(%arg0: i32) -> (i32, i32) {
    %c0_i32 = arith.constant 0 : i32
    %c0_i32_0 = arith.constant 0 : i32
    return %arg0, %c0_i32 : i32, i32
  }
}

</mosaic_0001>

<bundles_post_ra>
// kernel: swin_block_forward.1
= control target key start
LH: loop header
LB: loop body
LE: loop exit
PB: predicated region body
PF: predicated region fallthrough
CT: control target
= control target key end

     0   :  { %s4130_s13 = smov 0   ;;  %s5136_s0 = inlined_call_operand.vmem [shape: f32[128,32], index: 0, kind: input, shape index: {}, may-alias: {0,10}]   ;;  %s5137_s1 = inlined_call_operand.vmem [shape: bf16[32,96], index: 1, kind: input, shape index: {}]   ;;  %s5138_s2 = inlined_call_operand.vmem [shape: f32[1,96], index: 2, kind: input, shape index: {}]   ;;  %s5139_s3 = inlined_call_operand.vmem [shape: bf16[32,32], index: 3, kind: input, shape index: {}]   ;;  %s5140_s4 = inlined_call_operand.vmem [shape: f32[1,32], index: 4, kind: input, shape index: {}]   ;;  %s5141_s5 = inlined_call_operand.vmem [shape: bf16[4,4,16,16], index: 5, kind: input, shape index: {}]   ;;  %s5142_s6 = inlined_call_operand.vmem [shape: bf16[32,32], index: 6, kind: input, shape index: {}]   ;;  %s5143_s7 = inlined_call_operand.vmem [shape: f32[1,32], index: 7, kind: input, shape index: {}]   ;;  %s5144_s8 = inlined_call_operand.vmem [shape: bf16[32,32], index: 8, kind: input, shape index: {}]   ;;  %s5145_s9 = inlined_call_operand.vmem [shape: f32[1,32], index: 9, kind: input, shape index: {}]   ;;  %s5146_s10 = inlined_call_operand.vmem [shape: f32[128,32], index: 10, kind: output, shape index: {}, may-alias: {0,10}]  }
   0x1 LB: > { %s3305_s14 = sadd.s32 4294967295, %s4063_s13   ;;  %p3309_p0 = scmp.ge.s32.totalorder %s4063_s13, 1  ;;  %s4063_s13 = sphi %s4130_s13, %s20_s13  }
   0x2   : > { %p313_p1 = scmp.lt.s32.totalorder %s4063_s13, 3 }
   0x4   : > { %p314_p2 = pnand %p3309_p0, %p313_p1 }
   0x5   : > { %s3310_s15 = sshll.u32 (!%p314_p2), %s3305_s14, 3  ;;  %s4065_s26 = smov (!%p314_p2), 120  }
   0x6   : > { %317 = sbr.rel (%p314_p2) target bundleno = 2601 (0xa29), region = 60  ;;  %p352_p3 = scmp.lt.s32.totalorder (!%p314_p2), %s3310_s15, 15 }
   0x7   : > { %s4066_s27 = smov (!%p314_p2), 112   ;;  %s4069_s28 = smov (!%p314_p2), 104  }
   0x8   : > { %s4070_s29 = smov (!%p314_p2), 96   ;;  %s4071_s30 = smov (!%p314_p2), 64  }
   0x9   : > { %s4073_s18 = smov (!%p314_p2), 16   ;;  %s4074_s22 = smov (!%p314_p2), 24  }
   0xb   : > { %s5148_s15 = smov (!%p352_p3, %s3310_s15), 15  ;;  %vm372_vm0 = vcmask 261120   ;;  %v3865_v56 = vld [vmem:[%s5137_s1 + $0x8] sm:$0xff]   ;;  %v3866_v57 = vld [vmem:[%s5137_s1] sm:$0xff]   ;;  %vm4068_vm1 = vmmov 0   ;;  %vm616_vm2 = vcmask 64512  }
   0xc   : > { %s3311_s16 = sshll.u32 %s5148_s15, 3  ;;  %3543 = vmatprep.subr.bf16.mxu0 %v3865_v56  ;;  %3783 = vmatprep.subr.bf16.mxu1 %v3865_v56  ;;  %vm1495_vm3 = vcmask 130048   ;;  %vm2728_vm4 = vcmask 195584  }
   0xd   : > { %s4146_s19 = scalar_lea.vmem %s5136_s0, %s3311_s16  ;;  %3544 = vmatpush3.bf16.msra.mxu0 %v3865_v56  ;;  %3785 = vmatpush3.bf16.msra.mxu1 %v3865_v56 }
   0xe   : > { %v364_v0 = vld [vmem:[%s4146_s19] sm:$0xff]  ;;  %v366_v1 = vld [vmem:[%s4146_s19 + $0x10] sm:$0xff]  ;;  %v365_v2 = vld [vmem:[%s4146_s19 + $0x8] sm:$0xff]  ;;  %3545 = vmatprep.subr.bf16.mxu0 %v3866_v57  ;;  %3784 = vmatprep.subr.bf16.mxu1 %v3866_v57 }
   0xf   : > { %v373_v3 = vsel %vm372_vm0, %v364_v0, 0.0  ;;  %v379_v4 = vsel %vm372_vm0, %v366_v1, 0.0  ;;  %v367_v5 = vld [vmem:[%s4146_s19 + $0x18] sm:$0xff]  ;;  %v376_v6 = vsel %vm372_vm0, %v365_v2, 0.0  ;;  %v368_v8 = vld [vmem:[%s4146_s19 + $0x20] sm:$0xff]  ;;  %v369_v9 = vld [vmem:[%s4146_s19 + $0x28] sm:$0xff] }
  0x10   : > { %374 = vadd.xlane.f32.xlu0 %v373_v3  ;;  %380 = vadd.xlane.f32.xlu1 %v379_v4  ;;  %v382_v7 = vsel %vm372_vm0, %v367_v5, 0.0  ;;  %v385_v10 = vsel %vm372_vm0, %v368_v8, 0.0  ;;  %v388_v11 = vsel %vm372_vm0, %v369_v9, 0.0  ;;  %v370_v12 = vld [vmem:[%s4146_s19 + $0x30] sm:$0xff]  ;;  %v371_v13 = vld [vmem:[%s4146_s19 + $0x38] sm:$0xff] }
  0x11   : > { %v391_v14 = vsel %vm372_vm0, %v370_v12, 0.0  ;;  %v394_v15 = vsel %vm372_vm0, %v371_v13, 0.0  ;;  %3546 = vmatpush3.bf16.msra.mxu0 %v3866_v57  ;;  %3786 = vmatpush3.bf16.msra.mxu1 %v3866_v57 }
  0x14   : > { %377 = vadd.xlane.f32.xlu0 %v376_v6  ;;  %383 = vadd.xlane.f32.xlu1 %v382_v7 }
  0x18   : > { %386 = vadd.xlane.f32.xlu0 %v385_v10  ;;  %389 = vadd.xlane.f32.xlu1 %v388_v11 }
  0x1c   : > { %392 = vadd.xlane.f32.xlu0 %v391_v14  ;;  %395 = vadd.xlane.f32.xlu1 %v394_v15 }
  0x99   : > { %v375_v16 = vpop.xlane.xlu0 %374  ;;  %v381_v17 = vpop.xlane.xlu1 %380 }
  0x9a   : > { %v398_v18 = vmul.f32 0.03125, %v375_v16  ;;  %v400_v19 = vmul.f32 0.03125, %v381_v17 }
  0x9c   : > { %v4164_v20 = vsub.f32 %v364_v0, %v398_v18  ;;  %v4166_v21 = vsub.f32 %v366_v1, %v400_v19 }
  0x9d   : > { %v378_v22 = vpop.xlane.xlu0 %377  ;;  %v384_v23 = vpop.xlane.xlu1 %383 }
  0x9e   : > { %v399_v24 = vmul.f32 0.03125, %v378_v22  ;;  %v401_v25 = vmul.f32 0.03125, %v384_v23  ;;  %v414_v26 = vmul.f32 %v4164_v20, %v4164_v20  ;;  %v416_v27 = vmul.f32 %v4166_v21, %v4166_v21 }
  0xa0   : > { %v4172_v28 = vsub.f32 %v365_v2, %v399_v24  ;;  %v4174_v29 = vsub.f32 %v367_v5, %v401_v25  ;;  %v422_v30 = vsel %vm372_vm0, %v414_v26, 0.0  ;;  %v428_v33 = vsel %vm372_vm0, %v416_v27, 0.0 }
  0xa1   : > { %423 = vadd.xlane.f32.xlu0 %v422_v30  ;;  %v387_v31 = vpop.xlane.xlu0 %386  ;;  %v390_v32 = vpop.xlane.xlu1 %389 }
  0xa2   : > { %v402_v34 = vmul.f32 0.03125, %v387_v31  ;;  %v403_v35 = vmul.f32 0.03125, %v390_v32  ;;  %v415_v36 = vmul.f32 %v4172_v28, %v4172_v28  ;;  %v417_v37 = vmul.f32 %v4174_v29, %v4174_v29 }
  0xa4   : > { %v4182_v38 = vsub.f32 %v368_v8, %v402_v34  ;;  %v4184_v39 = vsub.f32 %v369_v9, %v403_v35  ;;  %v425_v40 = vsel %vm372_vm0, %v415_v36, 0.0  ;;  %v431_v43 = vsel %vm372_vm0, %v417_v37, 0.0 }
  0xa5   : > { %429 = vadd.xlane.f32.xlu0 %v428_v33  ;;  %426 = vadd.xlane.f32.xlu1 %v425_v40  ;;  %v393_v41 = vpop.xlane.xlu0 %392  ;;  %v396_v42 = vpop.xlane.xlu1 %395 }
  0xa6   : > { %v404_v44 = vmul.f32 0.03125, %v393_v41  ;;  %v405_v45 = vmul.f32 0.03125, %v396_v42  ;;  %v418_v46 = vmul.f32 %v4182_v38, %v4182_v38  ;;  %v419_v47 = vmul.f32 %v4184_v39, %v4184_v39  ;;  %v3314_v41 = vld [vmem:[%s5138_s2] ss:$0 sm:$0xff] }
  0xa8   : > { %v4192_v48 = vsub.f32 %v370_v12, %v404_v44  ;;  %v4194_v49 = vsub.f32 %v371_v13, %v405_v45  ;;  %v434_v50 = vsel %vm372_vm0, %v418_v46, 0.0  ;;  %v437_v51 = vsel %vm372_vm0, %v419_v47, 0.0 }
  0xa9   : > { %432 = vadd.xlane.f32.xlu1 %v431_v43  ;;  %435 = vadd.xlane.f32.xlu0 %v434_v50 }
  0xaa   : > { %v420_v52 = vmul.f32 %v4192_v48, %v4192_v48  ;;  %v421_v53 = vmul.f32 %v4194_v49, %v4194_v49 }
  0xac   : > { %v440_v54 = vsel %vm372_vm0, %v420_v52, 0.0  ;;  %v443_v55 = vsel %vm372_vm0, %v421_v53, 0.0 }
  0xad   : > { %438 = vadd.xlane.f32.xlu1 %v437_v51  ;;  %441 = vadd.xlane.f32.xlu0 %v440_v54 }
  0xb1   : > { %444 = vadd.xlane.f32.xlu1 %v443_v55  ;;  %v4067_v55 = vmov 0.0  }
  0xb2   : > { %3555 = vmatprep.subr.bf16.mxu1 %v4067_v55  ;;  %3567 = vmatprep.subr.bf16.mxu0 %v4067_v55 }
 0x12a   : > { %v424_v58 = vpop.xlane.xlu0 %423 }
 0x12b   : > { %v446_v59 = vmul.f32 0.03125, %v424_v58 }
 0x12d   : > { %v454_v60 = vadd.f32 1e-05, %v446_v59 }
 0x12e   : > { %v427_v61 = vpop.xlane.xlu1 %426  ;;  %v430_v62 = vpop.xlane.xlu0 %429 }
 0x12f   : > { %v447_v63 = vmul.f32 0.03125, %v427_v61  ;;  %v448_v0 = vmul.f32 0.03125, %v430_v62  ;;  %3873 = vrsqrt.f32 %v454_v60 }
 0x131   : > { %v455_v1 = vadd.f32 1e-05, %v447_v63  ;;  %v456_v2 = vadd.f32 1e-05, %v448_v0 }
 0x132   : > { %v433_v3 = vpop.xlane.xlu1 %432  ;;  %v436_v4 = vpop.xlane.xlu0 %435 }
 0x133   : > { %3875 = vrsqrt.f32 %v455_v1  ;;  %v449_v5 = vmul.f32 0.03125, %v433_v3  ;;  %v450_v6 = vmul.f32 0.03125, %v436_v4 }
 0x134   : > { %3877 = vrsqrt.f32 %v456_v2 }
 0x135   : > { %v457_v7 = vadd.f32 1e-05, %v449_v5  ;;  %v458_v8 = vadd.f32 1e-05, %v450_v6 }
 0x136   : > { %v439_v9 = vpop.xlane.xlu1 %438  ;;  %v442_v10 = vpop.xlane.xlu0 %441 }
 0x137   : > { %3879 = vrsqrt.f32 %v457_v7  ;;  %v451_v11 = vmul.f32 0.03125, %v439_v9  ;;  %v452_v12 = vmul.f32 0.03125, %v442_v10 }
 0x138   : > { %3881 = vrsqrt.f32 %v458_v8 }
 0x139   : > { %v459_v13 = vadd.f32 1e-05, %v451_v11  ;;  %v460_v14 = vadd.f32 1e-05, %v452_v12 }
 0x13a   : > { %v445_v15 = vpop.xlane.xlu1 %444 }
 0x13b   : > { %3883 = vrsqrt.f32 %v459_v13  ;;  %v453_v16 = vmul.f32 0.03125, %v445_v15 }
 0x13c   : > { %3885 = vrsqrt.f32 %v460_v14  ;;  %v3874_v18 = vpop.eup %3873 }
 0x13d   : > { %v461_v17 = vadd.f32 1e-05, %v453_v16  ;;  %v470_v22 = vmul.f32 %v3874_v18, %v4164_v20 }
 0x13f   : > { %3887 = vrsqrt.f32 %v461_v17 }
 0x140   : > { %v3876_v19 = vpop.eup %3875 }
 0x141   : > { %v471_v23 = vmul.f32 %v3876_v19, %v4172_v28  ;;  %v3878_v24 = vpop.eup %3877 }
 0x142   : > { %v472_v27 = vmul.f32 %v3878_v24, %v4166_v21 }
 0x143   : > { %v478_v25 = vpack.c.bf16 %v471_v23, %v470_v22 }
 0x144   : > { %v3880_v26 = vpop.eup %3879 }
 0x145   : > { %3547 = vmatprep.mubr.msk.bf16.mxu0 %vm372_vm0, %v478_v25  ;;  %v473_v30 = vmul.f32 %v3880_v26, %v4174_v29  ;;  %v3882_v31 = vpop.eup %3881 }
 0x146   : > { %v474_v34 = vmul.f32 %v3882_v31, %v4182_v38 }
 0x147   : > { %v479_v32 = vpack.c.bf16 %v473_v30, %v472_v27 }
 0x148   : > { %v3884_v33 = vpop.eup %3883 }
 0x149   : > { %3548 = vmatmul.mubr.msk.bf16.vlgmr.msra.gmra.mxu0 %vm372_vm0, %v479_v32  ;;  %v475_v20 = vmul.f32 %v3884_v33, %v4184_v39  ;;  %v3886_v35 = vpop.eup %3885 }
 0x14a   : > { %v476_v37 = vmul.f32 %v3886_v35, %v4192_v48  ;;  %3569 = vmatprep.mubr.msk.bf16.mxu0 %vm4068_vm1, %v4067_v55 }
 0x14b   : > { %v480_v28 = vpack.c.bf16 %v475_v20, %v474_v34 }
 0x14c   : > { %v3888_v36 = vpop.eup %3887 }
 0x14d   : > { %3551 = vmatprep.mubr.msk.bf16.mxu1 %vm372_vm0, %v480_v28  ;;  %v477_v21 = vmul.f32 %v3888_v36, %v4194_v49 }
 0x14f   : > { %v481_v40 = vpack.c.bf16 %v477_v21, %v476_v37 }
 0x151   : > { %3552 = vmatmul.mubr.msk.bf16.vlgmr.msra.gmra.mxu1 %vm372_vm0, %v481_v40 }
 0x152   : > { %3557 = vmatprep.mubr.msk.bf16.mxu1 %vm4068_vm1, %v4067_v55 }
 0x209   : > { %v3549_v29 = vpop.f32.mrf.mxu0 }
 0x20a   : > { %v560_v39 = vadd.f32 %v3549_v29, %v3314_v41 }
 0x20b   : > { %v551_v38 = vpop.f32.mrf.mxu0 }
 0x20c   : > { %v552_v45 = vadd.f32 %v3314_v41, %v551_v38 }
 0x20d   : > { %v3550_v42 = vpop.f32.mrf.mxu0 }
 0x20e   : > { %v563_v43 = vadd.f32 %v3550_v42, %v3314_v41 }
 0x20f   : > { %v554_v44 = vpop.f32.mrf.mxu0 }
 0x210   : > { %v4225_v46 = vpack.c.bf16 %v563_v43, %v560_v39  ;;  %v555_v47 = vadd.f32 %v3314_v41, %v554_v44  ;;  %v3377_v39 = vld [vmem:[%s5141_s5] sm:$0xff]  }
 0x211   : > { %v3553_v48 = vpop.f32.mrf.mxu1  ;;  %v3378_v43 = vunpack.c.l.bf16 %v3377_v39 }
 0x212   : > { %v4227_v50 = vpack.c.bf16 %v555_v47, %v552_v45  ;;  %592 = vrot.lane.b32.xlu1 %v4225_v46, %s4065_s26  ;;  %v576_v58 = vadd.f32 %v3553_v48, %v3314_v41 }
 0x213   : > { %v567_v49 = vpop.f32.mrf.mxu1 }
 0x214   : > { %590 = vrot.lane.b32.xlu0 %v4227_v50, %s4065_s26  ;;  %v568_v53 = vadd.f32 %v3314_v41, %v567_v49 }
 0x215   : > { %v3554_v51 = vpop.f32.mrf.mxu1 }
 0x216   : > { %v579_v56 = vadd.f32 %v3554_v51, %v3314_v41 }
 0x217   : > { %v570_v52 = vpop.f32.mrf.mxu1 }
 0x218   : > { %v571_v54 = vadd.f32 %v3314_v41, %v570_v52  ;;  %598 = vrot.lane.b32.xlu0 %v4227_v50, %s4066_s27  ;;  %v4242_v59 = vpack.c.bf16 %v579_v56, %v576_v58 }
 0x21a   : > { %v4234_v57 = vpack.c.bf16 %v571_v54, %v568_v53 }
 0x21c   : > { %602 = vrot.lane.b32.xlu0 %v4234_v57, %s4066_s27  ;;  %594 = vrot.lane.b32.xlu1 %v4234_v57, %s4065_s26 }
 0x220   : > { %606 = vrot.lane.b32.xlu0 %v4227_v50, %s4069_s28  ;;  %596 = vrot.lane.b32.xlu1 %v4242_v59, %s4065_s26 }
 0x224   : > { %614 = vrot.lane.b32.xlu0 %v4227_v50, %s4070_s29  ;;  %600 = vrot.lane.b32.xlu1 %v4225_v46, %s4066_s27 }
 0x228   : > { %612 = vrot.lane.b32.xlu0 %v4242_v59, %s4069_s28  ;;  %604 = vrot.lane.b32.xlu1 %v4242_v59, %s4066_s27 }
 0x22c   : > { %713 = vrot.lane.b32.xlu0 %v4234_v57, %s4070_s29  ;;  %608 = vrot.lane.b32.xlu1 %v4225_v46, %s4069_s28 }
 0x230   : > { %610 = vrot.lane.b32.xlu1 %v4234_v57, %s4069_s28 }
 0x234   : > { %664 = vrot.lane.b32.xlu1 %v4225_v46, %s4070_s29 }
 0x238   : > { %762 = vrot.lane.b32.xlu1 %v4242_v59, %s4070_s29 }
 0x284   : > { %v4259_v60 = vpop.permute.xlu1 %592 }
 0x285   : > { %860 = vrot.lane.b32.xlu1 %v4259_v60, %s4070_s29 }
 0x286   : > { %v4263_v61 = vpop.permute.xlu0 %590 }
 0x287   : > { %811 = vrot.lane.b32.xlu0 %v4263_v61, %s4070_s29 }
 0x28a   : > { %v4267_v62 = vpop.permute.xlu0 %598 }
 0x28e   : > { %v4269_v63 = vpop.permute.xlu1 %594  ;;  %v4271_v0 = vpop.permute.xlu0 %602 }
 0x28f   : > { %909 = vrot.lane.b32.xlu0 %v4269_v63, %s4070_s29 }
 0x292   : > { %v4275_v1 = vpop.permute.xlu1 %596  ;;  %v4277_v2 = vpop.permute.xlu0 %606 }
 0x293   : > { %958 = vrot.lane.b32.xlu1 %v4275_v1, %s4070_s29  ;;  %1007 = vrot.lane.b32.xlu0 %v4267_v62, %s4070_s29 }
 0x296   : > { %v4283_v3 = vpop.permute.xlu1 %600  ;;  %v615_v4 = vpop.permute.xlu0 %614 }
 0x297   : > { %v621_v5 = vsel %vm616_vm2, %v615_v4, 0  ;;  %1056 = vrot.lane.b32.xlu1 %v4283_v3, %s4070_s29  ;;  %1105 = vrot.lane.b32.xlu0 %v4271_v0, %s4070_s29 }
 0x298   : > { %3556 = vmatpush3.bf16.xpose.msra.mxu1 %v621_v5 }
 0x299   : > { %3561 = vmatprep.subr.bf16.mxu1 %v4067_v55 }
 0x29a   : > { %v4291_v6 = vpop.permute.xlu1 %604  ;;  %v4293_v7 = vpop.permute.xlu0 %612 }
 0x29b   : > { %1154 = vrot.lane.b32.xlu1 %v4291_v6, %s4070_s29  ;;  %1203 = vrot.lane.b32.xlu0 %v4277_v2, %s4070_s29 }
 0x29e   : > { %v4299_v8 = vpop.permute.xlu1 %608  ;;  %v714_v9 = vpop.permute.xlu0 %713 }
 0x29f   : > { %v719_v10 = vsel %vm616_vm2, %v714_v9, 0  ;;  %1252 = vrot.lane.b32.xlu1 %v4299_v8, %s4070_s29  ;;  %3558 = vmatmul.mubr.msk.bf16.vlgmr.msra.gmra.mxu1 %vm616_vm2, %v4227_v50 }
 0x2a0   : > { %3568 = vmatpush3.bf16.xpose.msra.mxu0 %v719_v10  ;;  %3563 = vmatprep.mubr.msk.bf16.mxu1 %vm4068_vm1, %v4067_v55  ;;  %v3442_v10 = vld [vmem:[%s5141_s5 + $0x18] sm:$0xff]  }
 0x2a1   : > { %3579 = vmatprep.subr.bf16.mxu0 %v4067_v55 }
 0x2a2   : > { %v4309_v11 = vpop.permute.xlu1 %610 }
 0x2a3   : > { %1301 = vrot.lane.b32.xlu0 %v4309_v11, %s4070_s29  ;;  %1350 = vrot.lane.b32.xlu1 %v4293_v7, %s4070_s29 }
 0x2a6   : > { %v665_v12 = vpop.permute.xlu1 %664 }
 0x2a7   : > { %v670_v13 = vsel %vm616_vm2, %v665_v12, 0  ;;  %1864 = vrot.lane.b32.xlu0 %v4227_v50, %s4071_s30  ;;  %1911 = vrot.lane.b32.xlu1 %v4225_v46, %s4071_s30  ;;  %v3441_v50 = vld [vmem:[%s5141_s5 + $0x10] sm:$0xff]  }
 0x2a8   : > { %3570 = vmatmul.mubr.msk.bf16.vlgmr.msra.gmra.mxu0 %vm616_vm2, %v4234_v57  ;;  %3562 = vmatpush3.bf16.xpose.msra.mxu1 %v670_v13  ;;  %v3386_v53 = vunpack.c.l.bf16 %v3441_v50  ;;  %v3387_v58 = vunpack.c.h.bf16 %v3441_v50  ;;  %v3446_v50 = vld [vmem:[%s5141_s5 + $0x38] sm:$0xff]  }
 0x2a9   : > { %3573 = vmatprep.subr.bf16.mxu1 %v4067_v55  ;;  %3581 = vmatprep.mubr.msk.bf16.mxu0 %vm4068_vm1, %v4067_v55 }
 0x2aa   : > { %v763_v14 = vpop.permute.xlu1 %762 }
 0x2ab   : > { %1958 = vrot.lane.b32.xlu0 %v4234_v57, %s4071_s30  ;;  %2005 = vrot.lane.b32.xlu1 %v4242_v59, %s4071_s30  ;;  %v768_v15 = vsel %vm616_vm2, %v763_v14, 0 }
 0x2af   : > { %2052 = vrot.lane.b32.xlu0 %v4263_v61, %s4071_s30  ;;  %3564 = vmatmul.mubr.msk.bf16.vlgmr.msra.gmra.mxu1 %vm616_vm2, %v4225_v46  ;;  %v3379_v46 = vunpack.c.h.bf16 %v3377_v39 }
 0x2b0   : > { %2099 = vrot.lane.b32.xlu1 %v4259_v60, %s4071_s30  ;;  %3574 = vmatpush3.bf16.xpose.msra.mxu1 %v768_v15  ;;  %v3390_v15 = vunpack.c.l.bf16 %v3442_v10 }
 0x2b1   : > { %3575 = vmatprep.mubr.msk.bf16.mxu1 %vm4068_vm1, %v4067_v55  ;;  %3585 = vmatprep.subr.bf16.mxu1 %v4067_v55 }
 0x2b3   : > { %2146 = vrot.lane.b32.xlu0 %v4269_v63, %s4071_s30 }
 0x2b4   : > { %2193 = vrot.lane.b32.xlu1 %v4275_v1, %s4071_s30 }
 0x2b7   : > { %2240 = vrot.lane.b32.xlu0 %v4267_v62, %s4071_s30  ;;  %3576 = vmatmul.mubr.msk.bf16.vlgmr.msra.gmra.mxu1 %vm616_vm2, %v4242_v59  ;;  %v3440_v59 = vld [vmem:[%s5141_s5 + $0x8] sm:$0xff]  }
 0x2b8   : > { %2287 = vrot.lane.b32.xlu1 %v4283_v3, %s4071_s30  ;;  %3587 = vmatprep.mubr.msk.bf16.mxu1 %vm4068_vm1, %v4067_v55 }
 0x2bc   : > { %2381 = vrot.lane.b32.xlu1 %v4291_v6, %s4071_s30 }
 0x2c0   : > { %2334 = vrot.lane.b32.xlu1 %v4271_v0, %s4071_s30 }
 0x2f7   : > { %v861_v16 = vpop.permute.xlu1 %860 }
 0x2f8   : > { %v866_v17 = vsel %vm616_vm2, %v861_v16, 0 }
 0x2f9   : > { %3586 = vmatpush3.bf16.xpose.msra.mxu1 %v866_v17  ;;  %v812_v18 = vpop.permute.xlu0 %811 }
 0x2fa   : > { %v817_v19 = vsel %vm616_vm2, %v812_v18, 0  ;;  %3597 = vmatprep.subr.bf16.mxu1 %v4067_v55 }
 0x2fb   : > { %3580 = vmatpush3.bf16.xpose.msra.mxu0 %v817_v19 }
 0x2fc   : > { %3591 = vmatprep.subr.bf16.mxu0 %v4067_v55 }
 0x300   : > { %3588 = vmatmul.mubr.msk.bf16.vlgmr.msra.gmra.mxu1 %vm616_vm2, %v4259_v60 }
 0x301   : > { %v910_v22 = vpop.permute.xlu0 %909  ;;  %3599 = vmatprep.mubr.msk.bf16.mxu1 %vm4068_vm1, %v4067_v55 }
 0x302   : > { %v915_v23 = vsel %vm616_vm2, %v910_v22, 0  ;;  %3582 = vmatmul.mubr.msk.bf16.vlgmr.msra.gmra.mxu0 %vm616_vm2, %v4263_v61  ;;  %v3391_v22 = vunpack.c.h.bf16 %v3442_v10 }
 0x303   : > { %3592 = vmatpush3.bf16.xpose.msra.mxu0 %v915_v23  ;;  %3593 = vmatprep.mubr.msk.bf16.mxu0 %vm4068_vm1, %v4067_v55 }
 0x304   : > { %3603 = vmatprep.subr.bf16.mxu0 %v4067_v55 }
 0x305   : > { %v959_v24 = vpop.permute.xlu1 %958  ;;  %v1008_v26 = vpop.permute.xlu0 %1007 }
 0x306   : > { %v964_v25 = vsel %vm616_vm2, %v959_v24, 0  ;;  %v1013_v27 = vsel %vm616_vm2, %v1008_v26, 0 }
 0x307   : > { %3598 = vmatpush3.bf16.xpose.msra.mxu1 %v964_v25 }
 0x308   : > { %3609 = vmatprep.subr.bf16.mxu1 %v4067_v55 }
 0x309   : > { %v1057_v30 = vpop.permute.xlu1 %1056  ;;  %v1106_v32 = vpop.permute.xlu0 %1105 }
 0x30a   : > { %3594 = vmatmul.mubr.msk.bf16.vlgmr.msra.gmra.mxu0 %vm616_vm2, %v4269_v63  ;;  %v1062_v31 = vsel %vm616_vm2, %v1057_v30, 0  ;;  %v1111_v33 = vsel %vm616_vm2, %v1106_v32, 0  ;;  %v3382_v63 = vunpack.c.l.bf16 %v3440_v59  ;;  %v3443_v32 = vld [vmem:[%s5141_s5 + $0x20] sm:$0xff]  }
 0x30b   : > { %3604 = vmatpush3.bf16.xpose.msra.mxu0 %v1013_v27  ;;  %3605 = vmatprep.mubr.msk.bf16.mxu0 %vm4068_vm1, %v4067_v55 }
 0x30c   : > { %3615 = vmatprep.subr.bf16.mxu0 %v4067_v55 }
 0x30d   : > { %v1155_v34 = vpop.permute.xlu1 %1154  ;;  %v1204_v35 = vpop.permute.xlu0 %1203 }
 0x30e   : > { %3600 = vmatmul.mubr.msk.bf16.vlgmr.msra.gmra.mxu1 %vm616_vm2, %v4275_v1  ;;  %v1160_v20 = vsel %vm616_vm2, %v1155_v34, 0  ;;  %v1209_v28 = vsel %vm616_vm2, %v1204_v35, 0  ;;  %v3394_v34 = vunpack.c.l.bf16 %v3443_v32 }
 0x30f   : > { %3610 = vmatpush3.bf16.xpose.msra.mxu1 %v1062_v31  ;;  %3611 = vmatprep.mubr.msk.bf16.mxu1 %vm4068_vm1, %v4067_v55  ;;  %v3444_v31 = vld [vmem:[%s5141_s5 + $0x28] sm:$0xff]  }
 0x310   : > { %3621 = vmatprep.subr.bf16.mxu1 %v4067_v55 }
 0x311   : > { %v1253_v36 = vpop.permute.xlu1 %1252 }
 0x312   : > { %3606 = vmatmul.mubr.msk.bf16.vlgmr.msra.gmra.mxu0 %vm616_vm2, %v4267_v62  ;;  %v1258_v37 = vsel %vm616_vm2, %v1253_v36, 0 }
 0x313   : > { %3616 = vmatpush3.bf16.xpose.msra.mxu0 %v1111_v33  ;;  %3617 = vmatprep.mubr.msk.bf16.mxu0 %vm4068_vm1, %v4067_v55  ;;  %v3398_v33 = vunpack.c.l.bf16 %v3444_v31 }
 0x314   : > { %3627 = vmatprep.subr.bf16.mxu0 %v4067_v55 }
 0x315   : > { %v1302_v21 = vpop.permute.xlu0 %1301  ;;  %v1351_v29 = vpop.permute.xlu1 %1350 }
 0x316   : > { %3612 = vmatmul.mubr.msk.bf16.vlgmr.msra.gmra.mxu1 %vm616_vm2, %v4283_v3  ;;  %v1307_v40 = vsel %vm616_vm2, %v1302_v21, 0  ;;  %v1356_v41 = vsel %vm616_vm2, %v1351_v29, 0  ;;  %v3395_v29 = vunpack.c.h.bf16 %v3443_v32 }
 0x317   : > { %3622 = vmatpush3.bf16.xpose.msra.mxu1 %v1160_v20  ;;  %3623 = vmatprep.mubr.msk.bf16.mxu1 %vm4068_vm1, %v4067_v55 }
 0x318   : > { %3633 = vmatprep.subr.bf16.mxu1 %v4067_v55 }
 0x319   : > { %v1865_v38 = vpop.permute.xlu0 %1864  ;;  %v1912_v42 = vpop.permute.xlu1 %1911 }
 0x31a   : > { %3618 = vmatmul.mubr.msk.bf16.vlgmr.msra.gmra.mxu0 %vm616_vm2, %v4271_v0 }
 0x31b   : > { %3628 = vmatpush3.bf16.xpose.msra.mxu0 %v1209_v28  ;;  %3629 = vmatprep.mubr.msk.bf16.mxu0 %vm4068_vm1, %v4067_v55  ;;  %v3399_v28 = vunpack.c.h.bf16 %v3444_v31 }
 0x31c   : > { %3639 = vmatprep.subr.bf16.mxu0 %v4067_v55 }
 0x31e   : > { %3624 = vmatmul.mubr.msk.bf16.vlgmr.msra.gmra.mxu1 %vm616_vm2, %v4291_v6  ;;  %v3383_v6 = vunpack.c.h.bf16 %v3440_v59 }
 0x31f   : > { %3634 = vmatpush3.bf16.xpose.msra.mxu1 %v1258_v37  ;;  %3635 = vmatprep.mubr.msk.bf16.mxu1 %vm4068_vm1, %v4067_v55 }
 0x320   : > { %3645 = vmatprep.subr.bf16.mxu1 %v4067_v55 }
 0x322   : > { %3630 = vmatmul.mubr.msk.bf16.vlgmr.msra.gmra.mxu0 %vm616_vm2, %v4277_v2 }
 0x323   : > { %3640 = vmatpush3.bf16.xpose.msra.mxu0 %v1307_v40  ;;  %3641 = vmatprep.mubr.msk.bf16.mxu0 %vm4068_vm1, %v4067_v55 }
 0x324   : > { %3651 = vmatprep.subr.bf16.mxu0 %v4067_v55 }
 0x326   : > { %3636 = vmatmul.mubr.msk.bf16.vlgmr.msra.gmra.mxu1 %vm616_vm2, %v4299_v8 }
 0x327   : > { %3646 = vmatpush3.bf16.xpose.msra.mxu1 %v1356_v41  ;;  %3647 = vmatprep.mubr.msk.bf16.mxu1 %vm4068_vm1, %v4067_v55 }
 0x328   : > { %3657 = vmatprep.subr.bf16.mxu1 %v4067_v55 }
 0x32a   : > { %3642 = vmatmul.mubr.msk.bf16.vlgmr.msra.gmra.mxu0 %vm616_vm2, %v4309_v11 }
 0x32b   : > { %3652 = vmatpush3.bf16.msra.mxu0 %v1865_v38  ;;  %3653 = vmatprep.mubr.msk.bf16.mxu0 %vm4068_vm1, %v4067_v55 }
 0x32c   : > { %3663 = vmatprep.subr.bf16.mxu0 %v4067_v55 }
 0x32e   : > { %3648 = vmatmul.mubr.msk.bf16.vlgmr.msra.gmra.mxu1 %vm616_vm2, %v4293_v7 }
 0x32f   : > { %3658 = vmatpush3.bf16.msra.mxu1 %v1912_v42  ;;  %3659 = vmatprep.mubr.msk.bf16.mxu1 %vm4068_vm1, %v4067_v55 }
 0x330   : > { %3669 = vmatprep.subr.bf16.mxu1 %v4067_v55 }
 0x35f   : > { %v657_v44 = vpop.f32.mrf.mxu1 }
 0x360   : > { %v4432_v45 = vadd.f32 %v3378_v43, %v657_v44 }
 0x361   : > { %v3559_v47 = vpop.f32.mrf.mxu1 }
 0x362   : > { %v1496_v48 = vsel %vm1495_vm3, %v4432_v45, -inf }
 0x363   : > { %1497 = vmax.xlane.f32.xlu0 %v1496_v48  ;;  %v660_v49 = vpop.f32.mrf.mxu1 }
 0x364   : > { %v4439_v51 = vadd.f32 %v3379_v46, %v660_v49 }
 0x365   : > { %v3560_v52 = vpop.f32.mrf.mxu1 }
 0x366   : > { %v1499_v54 = vsel %vm1495_vm3, %v4439_v51, -inf  ;;  %v3445_v52 = vld [vmem:[%s5141_s5 + $0x30] sm:$0xff]  }
 0x367   : > { %1500 = vmax.xlane.f32.xlu1 %v1499_v54  ;;  %v3406_v54 = vunpack.c.l.bf16 %v3446_v50 }
 0x368   : > { %v755_v56 = vpop.f32.mrf.mxu0 }
 0x369   : > { %v4443_v57 = vadd.f32 %v3386_v53, %v755_v56 }
 0x36a   : > { %v3571_v60 = vpop.f32.mrf.mxu0 }
 0x36b   : > { %v1508_v61 = vsel %vm1495_vm3, %v4443_v57, -inf }
 0x36c   : > { %1509 = vmax.xlane.f32.xlu0 %v1508_v61  ;;  %v758_v62 = vpop.f32.mrf.mxu0 }
 0x36d   : > { %v4450_v0 = vadd.f32 %v3387_v58, %v758_v62  ;;  %v3402_v58 = vunpack.c.l.bf16 %v3445_v52  ;;  %v3407_v62 = vunpack.c.h.bf16 %v3446_v50 }
 0x36e   : > { %v3572_v1 = vpop.f32.mrf.mxu0 }
 0x36f   : > { %v706_v3 = vpop.f32.mrf.mxu1  ;;  %v1511_v4 = vsel %vm1495_vm3, %v4450_v0, -inf }
 0x370   : > { %v4454_v5 = vadd.f32 %v3382_v63, %v706_v3  ;;  %1512 = vmax.xlane.f32.xlu1 %v1511_v4  ;;  %v3448_v3 = vld [vmem:[%s5141_s5 + $0x48] sm:$0xff]  }
 0x371   : > { %v3565_v9 = vpop.f32.mrf.mxu1  ;;  %v3415_v32 = vunpack.c.h.bf16 %v3448_v3 }
 0x372   : > { %v1502_v12 = vsel %vm1495_vm3, %v4454_v5, -inf }
 0x373   : > { %v709_v13 = vpop.f32.mrf.mxu1  ;;  %1503 = vmax.xlane.f32.xlu0 %v1502_v12 }
 0x374   : > { %v4461_v14 = vadd.f32 %v3383_v6, %v709_v13  ;;  %v3403_v6 = vunpack.c.h.bf16 %v3445_v52  ;;  %v3447_v13 = vld [vmem:[%s5141_s5 + $0x40] sm:$0xff]  }
 0x375   : > { %v3566_v16 = vpop.f32.mrf.mxu1 }
 0x376   : > { %v1505_v17 = vsel %vm1495_vm3, %v4461_v14, -inf  ;;  %v3414_v16 = vunpack.c.l.bf16 %v3448_v3 }
 0x377   : > { %v804_v18 = vpop.f32.mrf.mxu1  ;;  %1506 = vmax.xlane.f32.xlu0 %v1505_v17 }
 0x378   : > { %v4465_v19 = vadd.f32 %v3390_v15, %v804_v18 }
 0x379   : > { %v3577_v23 = vpop.f32.mrf.mxu1 }
 0x37a   : > { %v1514_v24 = vsel %vm1495_vm3, %v4465_v19, -inf  ;;  %v3410_v23 = vunpack.c.l.bf16 %v3447_v13 }
 0x37b   : > { %v807_v25 = vpop.f32.mrf.mxu1  ;;  %1515 = vmax.xlane.f32.xlu0 %v1514_v24 }
 0x37c   : > { %v4469_v26 = vadd.f32 %v3391_v22, %v807_v25 }
 0x37d   : > { %v3578_v27 = vpop.f32.mrf.mxu1 }
 0x37e   : > { %v1517_v30 = vsel %vm1495_vm3, %v4469_v26, -inf }
 0x37f   : > { %1518 = vmax.xlane.f32.xlu1 %v1517_v30 }
 0x3c0   : > { %v902_v20 = vpop.f32.mrf.mxu1 }
 0x3c1   : > { %v4479_v35 = vadd.f32 %v3398_v33, %v902_v20  ;;  %v3450_v20 = vld [vmem:[%s5141_s5 + $0x58] sm:$0xff]  }
 0x3c2   : > { %v853_v36 = vpop.f32.mrf.mxu0  ;;  %v3589_v37 = vpop.f32.mrf.mxu1 }
 0x3c3   : > { %v4481_v21 = vadd.f32 %v3394_v34, %v853_v36  ;;  %v1526_v40 = vsel %vm1495_vm3, %v4479_v35, -inf  ;;  %v3411_v36 = vunpack.c.h.bf16 %v3447_v13 }
 0x3c4   : > { %v905_v41 = vpop.f32.mrf.mxu1  ;;  %1527 = vmax.xlane.f32.xlu0 %v1526_v40  ;;  %v3583_v38 = vpop.f32.mrf.mxu0 }
 0x3c5   : > { %v4485_v42 = vadd.f32 %v3399_v28, %v905_v41  ;;  %v1520_v47 = vsel %vm1495_vm3, %v4481_v21, -inf  ;;  %v3449_v38 = vld [vmem:[%s5141_s5 + $0x50] sm:$0xff]  }
 0x3c6   : > { %v856_v39 = vpop.f32.mrf.mxu0  ;;  %v3590_v43 = vpop.f32.mrf.mxu1  ;;  %v3418_v50 = vunpack.c.l.bf16 %v3449_v38 }
 0x3c7   : > { %v4487_v44 = vadd.f32 %v3395_v29, %v856_v39  ;;  %v1529_v46 = vsel %vm1495_vm3, %v4485_v42, -inf  ;;  %v3422_v43 = vunpack.c.l.bf16 %v3450_v20 }
 0x3c8   : > { %1530 = vmax.xlane.f32.xlu1 %v1529_v46  ;;  %1521 = vmax.xlane.f32.xlu0 %v1520_v47  ;;  %v3584_v48 = vpop.f32.mrf.mxu0 }
 0x3c9   : > { %v1523_v53 = vsel %vm1495_vm3, %v4487_v44, -inf }
 0x3ca   : > { %v951_v49 = vpop.f32.mrf.mxu0 }
 0x3cb   : > { %v4506_v4 = vadd.f32 %v3402_v58, %v951_v49  ;;  %v3423_v58 = vunpack.c.h.bf16 %v3450_v20 }
 0x3cc   : > { %1524 = vmax.xlane.f32.xlu1 %v1523_v53  ;;  %v3595_v56 = vpop.f32.mrf.mxu0 }
 0x3cd   : > { %v1532_v25 = vsel %vm1495_vm3, %v4506_v4, -inf }
 0x3ce   : > { %v954_v59 = vpop.f32.mrf.mxu0  ;;  %v1000_v60 = vpop.f32.mrf.mxu1 }
 0x3cf   : > { %v4501_v61 = vadd.f32 %v3406_v54, %v1000_v60  ;;  %v4515_v22 = vadd.f32 %v3403_v6, %v954_v59 }
 0x3d0   : > { %v3596_v63 = vpop.f32.mrf.mxu0  ;;  %v3601_v1 = vpop.f32.mrf.mxu1 }
 0x3d1   : > { %v1538_v9 = vsel %vm1495_vm3, %v4501_v61, -inf  ;;  %v1535_v40 = vsel %vm1495_vm3, %v4515_v22, -inf  ;;  %v3419_v1 = vunpack.c.h.bf16 %v3449_v38 }
 0x3d2   : > { %v1003_v10 = vpop.f32.mrf.mxu1  ;;  %1539 = vmax.xlane.f32.xlu0 %v1538_v9  ;;  %v1049_v12 = vpop.f32.mrf.mxu0 }
 0x3d3   : > { %v4513_v15 = vadd.f32 %v3407_v62, %v1003_v10  ;;  %v4526_v28 = vadd.f32 %v3410_v23, %v1049_v12  ;;  %v3452_v62 = vld [vmem:[%s5141_s5 + $0x68] sm:$0xff]   ;;  %v3451_v12 = vld [vmem:[%s5141_s5 + $0x60] sm:$0xff]  }
 0x3d4   : > { %v3602_v17 = vpop.f32.mrf.mxu1  ;;  %v3607_v18 = vpop.f32.mrf.mxu0 }
 0x3d5   : > { %v1541_v24 = vsel %vm1495_vm3, %v4513_v15, -inf  ;;  %v1544_v52 = vsel %vm1495_vm3, %v4526_v28, -inf }
 0x3d6   : > { %v1098_v27 = vpop.f32.mrf.mxu1  ;;  %1542 = vmax.xlane.f32.xlu1 %v1541_v24  ;;  %1533 = vmax.xlane.f32.xlu0 %v1532_v25  ;;  %v1052_v30 = vpop.f32.mrf.mxu0  ;;  %v3426_v24 = vunpack.c.l.bf16 %v3451_v12 }
 0x3d7   : > { %v4521_v31 = vadd.f32 %v3414_v16, %v1098_v27  ;;  %v4537_v48 = vadd.f32 %v3411_v36, %v1052_v30  ;;  %v3430_v16 = vunpack.c.l.bf16 %v3452_v62 }
 0x3d8   : > { %v3608_v33 = vpop.f32.mrf.mxu0  ;;  %v3613_v34 = vpop.f32.mrf.mxu1 }
 0x3d9   : > { %v1550_v37 = vsel %vm1495_vm3, %v4521_v31, -inf  ;;  %v1547_v6 = vsel %vm1495_vm3, %v4537_v48, -inf  ;;  %v3431_v34 = vunpack.c.h.bf16 %v3452_v62 }
 0x3da   : > { %v1101_v29 = vpop.f32.mrf.mxu1  ;;  %1551 = vmax.xlane.f32.xlu0 %v1550_v37  ;;  %1536 = vmax.xlane.f32.xlu1 %v1535_v40  ;;  %v1147_v41 = vpop.f32.mrf.mxu0  ;;  %v3454_v37 = vld [vmem:[%s5141_s5 + $0x78] sm:$0xff]  }
 0x3db   : > { %v4535_v39 = vadd.f32 %v3415_v32, %v1101_v29  ;;  %v4548_v63 = vadd.f32 %v3418_v50, %v1147_v41  ;;  %v3427_v29 = vunpack.c.h.bf16 %v3451_v12  ;;  %v4591_v12 = vpop.permute.xlu0 %1958 }
 0x3dc   : > { %v3614_v46 = vpop.f32.mrf.mxu1  ;;  %v3619_v47 = vpop.f32.mrf.mxu0 }
 0x3dd   : > { %v1553_v49 = vsel %vm1495_vm3, %v4535_v39, -inf  ;;  %v1556_v27 = vsel %vm1495_vm3, %v4548_v63, -inf  ;;  %v3453_v47 = vld [vmem:[%s5141_s5 + $0x70] sm:$0xff]  }
 0x3de   : > { %v1196_v53 = vpop.f32.mrf.mxu1  ;;  %1554 = vmax.xlane.f32.xlu1 %v1553_v49  ;;  %1545 = vmax.xlane.f32.xlu0 %v1544_v52  ;;  %v1150_v54 = vpop.f32.mrf.mxu0  ;;  %v3438_v49 = vunpack.c.l.bf16 %v3454_v37 }
 0x3df   : > { %v4543_v56 = vadd.f32 %v3422_v43, %v1196_v53  ;;  %v4559_v23 = vadd.f32 %v3419_v1, %v1150_v54 }
 0x3e0   : > { %v3620_v59 = vpop.f32.mrf.mxu0  ;;  %v3625_v60 = vpop.f32.mrf.mxu1 }
 0x3e1   : > { %v1562_v3 = vsel %vm1495_vm3, %v4543_v56, -inf  ;;  %v1559_v38 = vsel %vm1495_vm3, %v4559_v23, -inf }
 0x3e2   : > { %v1199_v9 = vpop.f32.mrf.mxu1  ;;  %1563 = vmax.xlane.f32.xlu0 %v1562_v3  ;;  %1548 = vmax.xlane.f32.xlu1 %v1547_v6  ;;  %v1245_v10 = vpop.f32.mrf.mxu0  ;;  %v3439_v6 = vunpack.c.h.bf16 %v3454_v37 }
 0x3e3   : > { %v4557_v13 = vadd.f32 %v3423_v58, %v1199_v9  ;;  %v4570_v40 = vadd.f32 %v3426_v24, %v1245_v10  ;;  %v3434_v58 = vunpack.c.l.bf16 %v3453_v47  ;;  %v4589_v9 = vpop.permute.xlu1 %2005 }
 0x3e4   : > { %v3626_v17 = vpop.f32.mrf.mxu1  ;;  %v3631_v18 = vpop.f32.mrf.mxu0 }
 0x3e5   : > { %v1565_v25 = vsel %vm1495_vm3, %v4557_v13, -inf  ;;  %v1568_v60 = vsel %vm1495_vm3, %v4570_v40, -inf  ;;  %v3435_v17 = vunpack.c.h.bf16 %v3453_v47 }
 0x3e6   : > { %v1294_v30 = vpop.f32.mrf.mxu1  ;;  %1566 = vmax.xlane.f32.xlu1 %v1565_v25  ;;  %1557 = vmax.xlane.f32.xlu0 %v1556_v27  ;;  %v1248_v32 = vpop.f32.mrf.mxu0 }
 0x3e7   : > { %v4565_v33 = vadd.f32 %v3430_v16, %v1294_v30  ;;  %v4581_v54 = vadd.f32 %v3427_v29, %v1248_v32  ;;  %v4607_v37 = vpop.permute.xlu1 %2099  ;;  %v4609_v29 = vpop.permute.xlu0 %2052 }
 0x3e8   : > { %v3632_v20 = vpop.f32.mrf.mxu0  ;;  %v3637_v36 = vpop.f32.mrf.mxu1 }
 0x3e9   : > { %v1574_v41 = vsel %vm1495_vm3, %v4565_v33, -inf  ;;  %v1571_v25 = vsel %vm1495_vm3, %v4581_v54, -inf }
 0x3ea   : > { %v1297_v43 = vpop.f32.mrf.mxu1  ;;  %1575 = vmax.xlane.f32.xlu0 %v1574_v41  ;;  %1560 = vmax.xlane.f32.xlu1 %v1559_v38  ;;  %v1343_v46 = vpop.f32.mrf.mxu0 }
 0x3eb   : > { %v4579_v50 = vadd.f32 %v3431_v34, %v1297_v43  ;;  %v4593_v16 = vadd.f32 %v3434_v58, %v1343_v46  ;;  %v4613_v38 = vpop.permute.xlu1 %2193  ;;  %v4615_v43 = vpop.permute.xlu0 %2146 }
 0x3ec   : > { %v3638_v52 = vpop.f32.mrf.mxu1  ;;  %v3643_v53 = vpop.f32.mrf.mxu0 }
 0x3ed   : > { %v1577_v59 = vsel %vm1495_vm3, %v4579_v50, -inf  ;;  %v1580_v36 = vsel %vm1495_vm3, %v4593_v16, -inf }
 0x3ee   : > { %v1392_v62 = vpop.f32.mrf.mxu1  ;;  %1578 = vmax.xlane.f32.xlu1 %v1577_v59  ;;  %1569 = vmax.xlane.f32.xlu0 %v1568_v60  ;;  %v1346_v1 = vpop.f32.mrf.mxu0 }
 0x3ef   : > { %v4587_v3 = vadd.f32 %v3438_v49, %v1392_v62  ;;  %v4601_v34 = vadd.f32 %v3435_v17, %v1346_v1  ;;  %v4617_v46 = vpop.permute.xlu1 %2287  ;;  %v4619_v47 = vpop.permute.xlu0 %2240 }
 0x3f0   : > { %v3649_v10 = vpop.f32.mrf.mxu1  ;;  %v3644_v18 = vpop.f32.mrf.mxu0 }
 0x3f1   : > { %v1586_v24 = vsel %vm1495_vm3, %v4587_v3, -inf  ;;  %v1583_v41 = vsel %vm1495_vm3, %v4601_v34, -inf }
 0x3f2   : > { %v1395_v27 = vpop.f32.mrf.mxu1  ;;  %1587 = vmax.xlane.f32.xlu0 %v1586_v24  ;;  %1572 = vmax.xlane.f32.xlu1 %v1571_v25 }
 0x3f3   : > { %v4599_v30 = vadd.f32 %v3439_v6, %v1395_v27  ;;  %v1498_v49 = vpop.xlane.xlu0 %1497  ;;  %v4621_v52 = vpop.permute.xlu1 %2381 }
 0x3f4   : > { %v3650_v32 = vpop.f32.mrf.mxu1  ;;  %v1592_v60 = vsub.f32 %v4432_v45, %v1498_v49 }
 0x3f5   : > { %v1589_v20 = vsel %vm1495_vm3, %v4599_v30, -inf }
 0x3f6   : > { %1590 = vmax.xlane.f32.xlu1 %v1589_v20  ;;  %1581 = vmax.xlane.f32.xlu0 %v1580_v36  ;;  %v1624_v10 = vmul.f32 1.442695, %v1592_v60 }
 0x3f7   : > { %v1510_v53 = vpop.xlane.xlu0 %1509  ;;  %v4627_v58 = vpop.permute.xlu1 %2334 }
 0x3f8   : > { %v1596_v17 = vsub.f32 %v4443_v57, %v1510_v53  ;;  %3889 = vpow2.f32 %v1624_v10 }
 0x3fa   : > { %1584 = vmax.xlane.f32.xlu1 %v1583_v41 }
 0x3fb   : > { %v1501_v62 = vpop.xlane.xlu1 %1500 }
 0x3fc   : > { %v1504_v59 = vpop.xlane.xlu0 %1503  ;;  %v1593_v1 = vsub.f32 %v4439_v51, %v1501_v62 }
 0x3fe   : > { %v1626_v24 = vmul.f32 1.442695, %v1593_v1 }
 0x3ff   : > { %v1513_v18 = vpop.xlane.xlu1 %1512 }
 0x400   : > { %v1507_v6 = vpop.xlane.xlu0 %1506  ;;  %v1597_v25 = vsub.f32 %v4450_v0, %v1513_v18  ;;  %3891 = vpow2.f32 %v1626_v24 }
 0x401   : > { %v1595_v45 = vsub.f32 %v4461_v14, %v1507_v6 }
 0x402   : > { %v1634_v32 = vmul.f32 1.442695, %v1597_v25 }
 0x403   : > { %v1630_v57 = vmul.f32 1.442695, %v1595_v45 }
 0x404   : > { %v1516_v27 = vpop.xlane.xlu0 %1515 }
 0x405   : > { %v1598_v51 = vsub.f32 %v4465_v19, %v1516_v27 }
 0x407   : > { %v1636_v41 = vmul.f32 1.442695, %v1598_v51 }
 0x408   : > { %v1519_v36 = vpop.xlane.xlu1 %1518 }
 0x409   : > { %v1599_v0 = vsub.f32 %v4469_v26, %v1519_v36 }
 0x40b   : > { %2475 = vrot.lane.b32.xlu1 %v4299_v8, %s4071_s30  ;;  %v1632_v8 = vmul.f32 1.442695, %v1596_v17  ;;  %v1638_v49 = vmul.f32 1.442695, %v1599_v0 }
 0x40c   : > { %2428 = vrot.lane.b32.xlu0 %v4277_v2, %s4071_s30  ;;  %v1594_v2 = vsub.f32 %v4454_v5, %v1504_v59  ;;  %v4637_v5 = vpop.eup %3889 }
 0x40d   : > { %3893 = vpow2.f32 %v1632_v8  ;;  %v4639_v53 = vpop.eup %3891  ;;  %v1688_v14 = vsel %vm1495_vm3, %v4637_v5, 0.0 }
 0x40e   : > { %v1628_v20 = vmul.f32 1.442695, %v1594_v2  ;;  %3895 = vpow2.f32 %v1634_v32  ;;  %v1691_v60 = vsel %vm1495_vm3, %v4639_v53, 0.0 }
 0x410   : > { %3897 = vpow2.f32 %v1628_v20 }
 0x411   : > { %3899 = vpow2.f32 %v1630_v57 }
 0x412   : > { %3901 = vpow2.f32 %v1636_v41 }
 0x413   : > { %3903 = vpow2.f32 %v1638_v49 }
 0x41a   : > { %v4643_v59 = vpop.eup %3893 }
 0x41b   : > { %v4645_v19 = vpop.eup %3895  ;;  %v1700_v26 = vsel %vm1495_vm3, %v4643_v59, 0.0 }
 0x41c   : > { %v1703_v6 = vsel %vm1495_vm3, %v4645_v19, 0.0 }
 0x41d   : > { %v4651_v62 = vpop.eup %3897 }
 0x41e   : > { %v4653_v1 = vpop.eup %3899  ;;  %v1694_v10 = vsel %vm1495_vm3, %v4651_v62, 0.0 }
 0x41f   : > { %v4659_v17 = vpop.eup %3901  ;;  %v1697_v18 = vsel %vm1495_vm3, %v4653_v1, 0.0 }
 0x420   : > { %v1706_v24 = vsel %vm1495_vm3, %v4659_v17, 0.0  ;;  %v4665_v25 = vpop.eup %3903 }
 0x421   : > { %v1709_v8 = vsel %vm1495_vm3, %v4665_v25, 0.0 }
 0x42b   : > { %1689 = vadd.xlane.f32.xlu0 %v1688_v14 }
 0x42f   : > { %1692 = vadd.xlane.f32.xlu1 %v1691_v60  ;;  %1701 = vadd.xlane.f32.xlu0 %v1700_v26 }
 0x433   : > { %1704 = vadd.xlane.f32.xlu1 %v1703_v6  ;;  %1695 = vadd.xlane.f32.xlu0 %v1694_v10 }
 0x437   : > { %1698 = vadd.xlane.f32.xlu1 %v1697_v18  ;;  %1707 = vadd.xlane.f32.xlu0 %v1706_v24 }
 0x43b   : > { %1710 = vadd.xlane.f32.xlu1 %v1709_v8 }
 0x44d   : > { %v1528_v2 = vpop.xlane.xlu0 %1527 }
 0x44e   : > { %v1602_v27 = vsub.f32 %v4479_v35, %v1528_v2 }
 0x450   : > { %v1644_v32 = vmul.f32 1.442695, %v1602_v27 }
 0x451   : > { %v1531_v45 = vpop.xlane.xlu1 %1530  ;;  %v1522_v20 = vpop.xlane.xlu0 %1521 }
 0x452   : > { %3905 = vpow2.f32 %v1644_v32  ;;  %v1603_v51 = vsub.f32 %v4485_v42, %v1531_v45  ;;  %v1600_v36 = vsub.f32 %v4481_v21, %v1522_v20 }
 0x454   : > { %v1646_v57 = vmul.f32 1.442695, %v1603_v51  ;;  %v1640_v41 = vmul.f32 1.442695, %v1600_v36 }
 0x455   : > { %v1525_v0 = vpop.xlane.xlu1 %1524 }
 0x456   : > { %3907 = vpow2.f32 %v1646_v57  ;;  %v1601_v49 = vsub.f32 %v4487_v44, %v1525_v0 }
 0x457   : > { %3909 = vpow2.f32 %v1640_v41 }
 0x458   : > { %v1642_v14 = vmul.f32 1.442695, %v1601_v49 }
 0x45a   : > { %3911 = vpow2.f32 %v1642_v14 }
 0x45b   : > { %v1540_v60 = vpop.xlane.xlu0 %1539 }
 0x45c   : > { %v1606_v35 = vsub.f32 %v4501_v61, %v1540_v60 }
 0x45e   : > { %v1652_v26 = vmul.f32 1.442695, %v1606_v35 }
 0x45f   : > { %v4674_v6 = vpop.eup %3905  ;;  %v1543_v10 = vpop.xlane.xlu1 %1542 }
 0x460   : > { %v1534_v18 = vpop.xlane.xlu0 %1533  ;;  %3913 = vpow2.f32 %v1652_v26  ;;  %v1607_v21 = vsub.f32 %v4513_v15, %v1543_v10  ;;  %v1718_v24 = vsel %vm1495_vm3, %v4674_v6, 0.0 }
 0x461   : > { %v1604_v42 = vsub.f32 %v4506_v4, %v1534_v18  ;;  %1719 = vadd.xlane.f32.xlu0 %v1718_v24 }
 0x462   : > { %v1654_v44 = vmul.f32 1.442695, %v1607_v21 }
 0x463   : > { %v1648_v8 = vmul.f32 1.442695, %v1604_v42  ;;  %v4680_v2 = vpop.eup %3907  ;;  %v1537_v27 = vpop.xlane.xlu1 %1536 }
 0x464   : > { %v1552_v61 = vpop.xlane.xlu0 %1551  ;;  %v4682_v32 = vpop.eup %3909  ;;  %3915 = vpow2.f32 %v1654_v44  ;;  %v1605_v45 = vsub.f32 %v4515_v22, %v1537_v27  ;;  %v1721_v4 = vsel %vm1495_vm3, %v4680_v2, 0.0 }
 0x465   : > { %v1610_v20 = vsub.f32 %v4521_v31, %v1552_v61  ;;  %3917 = vpow2.f32 %v1648_v8  ;;  %1722 = vadd.xlane.f32.xlu1 %v1721_v4  ;;  %v1712_v15 = vsel %vm1495_vm3, %v4682_v32, 0.0 }
 0x466   : > { %v1650_v51 = vmul.f32 1.442695, %v1605_v45  ;;  %1713 = vadd.xlane.f32.xlu0 %v1712_v15 }
 0x467   : > { %v1660_v36 = vmul.f32 1.442695, %v1610_v20  ;;  %v4690_v57 = vpop.eup %3911  ;;  %v1555_v41 = vpop.xlane.xlu1 %1554 }
 0x468   : > { %v1546_v0 = vpop.xlane.xlu0 %1545  ;;  %3919 = vpow2.f32 %v1650_v51  ;;  %v1611_v22 = vsub.f32 %v4535_v39, %v1555_v41  ;;  %v1715_v49 = vsel %vm1495_vm3, %v4690_v57, 0.0 }
 0x469   : > { %v1608_v31 = vsub.f32 %v4526_v28, %v1546_v0  ;;  %3921 = vpow2.f32 %v1660_v36  ;;  %1716 = vadd.xlane.f32.xlu1 %v1715_v49 }
 0x46a   : > { %v1662_v60 = vmul.f32 1.442695, %v1611_v22 }
 0x46b   : > { %v1656_v14 = vmul.f32 1.442695, %v1608_v31  ;;  %v1549_v35 = vpop.xlane.xlu1 %1548 }
 0x46c   : > { %v1564_v26 = vpop.xlane.xlu0 %1563  ;;  %v1609_v10 = vsub.f32 %v4537_v48, %v1549_v35 }
 0x46d   : > { %v1614_v18 = vsub.f32 %v4543_v56, %v1564_v26  ;;  %v4698_v21 = vpop.eup %3913  ;;  %3923 = vpow2.f32 %v1656_v14 }
 0x46e   : > { %v1658_v42 = vmul.f32 1.442695, %v1609_v10  ;;  %v1730_v28 = vsel %vm1495_vm3, %v4698_v21, 0.0  ;;  %3925 = vpow2.f32 %v1662_v60 }
 0x46f   : > { %v1668_v39 = vmul.f32 1.442695, %v1614_v18  ;;  %v1567_v24 = vpop.xlane.xlu1 %1566  ;;  %1731 = vadd.xlane.f32.xlu0 %v1730_v28 }
 0x470   : > { %v1558_v44 = vpop.xlane.xlu0 %1557  ;;  %3927 = vpow2.f32 %v1658_v42  ;;  %v1615_v8 = vsub.f32 %v4557_v13, %v1567_v24 }
 0x471   : > { %v1612_v27 = vsub.f32 %v4548_v63, %v1558_v44  ;;  %v4704_v48 = vpop.eup %3915  ;;  %3929 = vpow2.f32 %v1668_v39 }
 0x472   : > { %v4706_v56 = vpop.eup %3917  ;;  %v1733_v45 = vsel %vm1495_vm3, %v4704_v48, 0.0  ;;  %v1670_v20 = vmul.f32 1.442695, %v1615_v8 }
 0x473   : > { %v1664_v61 = vmul.f32 1.442695, %v1612_v27  ;;  %v1561_v4 = vpop.xlane.xlu1 %1560  ;;  %1734 = vadd.xlane.f32.xlu1 %v1733_v45  ;;  %v1724_v15 = vsel %vm1495_vm3, %v4706_v56, 0.0 }
 0x474   : > { %v1576_v51 = vpop.xlane.xlu0 %1575  ;;  %v1613_v13 = vsub.f32 %v4559_v23, %v1561_v4  ;;  %1725 = vadd.xlane.f32.xlu0 %v1724_v15 }
 0x475   : > { %v1618_v63 = vsub.f32 %v4565_v33, %v1576_v51  ;;  %v4714_v36 = vpop.eup %3919  ;;  %3931 = vpow2.f32 %v1664_v61 }
 0x476   : > { %v4716_v41 = vpop.eup %3921  ;;  %v1666_v0 = vmul.f32 1.442695, %v1613_v13  ;;  %v1727_v31 = vsel %vm1495_vm3, %v4714_v36, 0.0  ;;  %3933 = vpow2.f32 %v1670_v20 }
 0x477   : > { %v1676_v22 = vmul.f32 1.442695, %v1618_v63  ;;  %v1579_v49 = vpop.xlane.xlu1 %1578  ;;  %1728 = vadd.xlane.f32.xlu1 %v1727_v31  ;;  %v1742_v14 = vsel %vm1495_vm3, %v4716_v41, 0.0 }
 0x478   : > { %v1570_v23 = vpop.xlane.xlu0 %1569  ;;  %3935 = vpow2.f32 %v1666_v0  ;;  %v1619_v33 = vsub.f32 %v4579_v50, %v1579_v49  ;;  %1743 = vadd.xlane.f32.xlu0 %v1742_v14 }
 0x479   : > { %v1616_v60 = vsub.f32 %v4570_v40, %v1570_v23  ;;  %3937 = vpow2.f32 %v1676_v22 }
 0x47a   : > { %v4724_v35 = vpop.eup %3923  ;;  %v1678_v10 = vmul.f32 1.442695, %v1619_v33 }
 0x47b   : > { %v1672_v26 = vmul.f32 1.442695, %v1616_v60  ;;  %v1573_v18 = vpop.xlane.xlu1 %1572  ;;  %v1736_v42 = vsel %vm1495_vm3, %v4724_v35, 0.0  ;;  %v4728_v28 = vpop.eup %3925 }
 0x47c   : > { %v1588_v39 = vpop.xlane.xlu0 %1587  ;;  %v1617_v24 = vsub.f32 %v4581_v54, %v1573_v18  ;;  %1737 = vadd.xlane.f32.xlu1 %v1736_v42  ;;  %v1745_v20 = vsel %vm1495_vm3, %v4728_v28, 0.0 }
 0x47d   : > { %v1622_v50 = vsub.f32 %v4587_v3, %v1588_v39  ;;  %v4732_v44 = vpop.eup %3927  ;;  %3939 = vpow2.f32 %v1672_v26 }
 0x47e   : > { %v1674_v40 = vmul.f32 1.442695, %v1617_v24  ;;  %v1739_v27 = vsel %vm1495_vm3, %v4732_v44, 0.0  ;;  %v4736_v61 = vpop.eup %3929  ;;  %3941 = vpow2.f32 %v1678_v10 }
 0x47f   : > { %v1684_v8 = vmul.f32 1.442695, %v1622_v50  ;;  %v1591_v45 = vpop.xlane.xlu1 %1590  ;;  %1740 = vadd.xlane.f32.xlu0 %v1739_v27  ;;  %v1754_v13 = vsel %vm1495_vm3, %v4736_v61, 0.0 }
 0x480   : > { %v1582_v54 = vpop.xlane.xlu0 %1581  ;;  %3943 = vpow2.f32 %v1674_v40  ;;  %v1623_v3 = vsub.f32 %v4599_v30, %v1591_v45  ;;  %1746 = vadd.xlane.f32.xlu1 %v1745_v20 }
 0x481   : > { %v1620_v4 = vsub.f32 %v4593_v16, %v1582_v54  ;;  %3945 = vpow2.f32 %v1684_v8 }
 0x482   : > { %v4742_v15 = vpop.eup %3931  ;;  %v1686_v63 = vmul.f32 1.442695, %v1623_v3 }
 0x483   : > { %v1680_v51 = vmul.f32 1.442695, %v1620_v4  ;;  %v1585_v0 = vpop.xlane.xlu1 %1584  ;;  %1755 = vadd.xlane.f32.xlu0 %v1754_v13  ;;  %v1748_v22 = vsel %vm1495_vm3, %v4742_v15, 0.0  ;;  %v4748_v31 = vpop.eup %3933 }
 0x484   : > { %v1621_v30 = vsub.f32 %v4601_v34, %v1585_v0  ;;  %1749 = vadd.xlane.f32.xlu1 %v1748_v22  ;;  %v1757_v33 = vsel %vm1495_vm3, %v4748_v31, 0.0  ;;  %v4793_v3 = vpop.permute.xlu0 %2428 }
 0x485   : > { %v4751_v49 = vpop.eup %3935  ;;  %3947 = vpow2.f32 %v1680_v51 }
 0x486   : > { %v1682_v16 = vmul.f32 1.442695, %v1621_v30  ;;  %v1751_v14 = vsel %vm1495_vm3, %v4751_v49, 0.0  ;;  %v4755_v23 = vpop.eup %3937  ;;  %3949 = vpow2.f32 %v1686_v63 }
 0x487   : > { %1752 = vadd.xlane.f32.xlu0 %v1751_v14  ;;  %v1766_v34 = vsel %vm1495_vm3, %v4755_v23, 0.0  ;;  %v4795_v4 = vpop.permute.xlu1 %2475 }
 0x488   : > { %3951 = vpow2.f32 %v1682_v16  ;;  %1758 = vadd.xlane.f32.xlu1 %v1757_v33 }
 0x48a   : > { %v4759_v60 = vpop.eup %3939 }
 0x48b   : > { %1767 = vadd.xlane.f32.xlu0 %v1766_v34  ;;  %v1760_v26 = vsel %vm1495_vm3, %v4759_v60, 0.0  ;;  %v4765_v10 = vpop.eup %3941 }
 0x48c   : > { %1761 = vadd.xlane.f32.xlu1 %v1760_v26  ;;  %v1769_v24 = vsel %vm1495_vm3, %v4765_v10, 0.0 }
 0x48d   : > { %v4767_v18 = vpop.eup %3943 }
 0x48e   : > { %v1763_v42 = vsel %vm1495_vm3, %v4767_v18, 0.0  ;;  %v4771_v39 = vpop.eup %3945 }
 0x48f   : > { %1764 = vadd.xlane.f32.xlu0 %v1763_v42  ;;  %v1778_v40 = vsel %vm1495_vm3, %v4771_v39, 0.0 }
 0x490   : > { %1770 = vadd.xlane.f32.xlu1 %v1769_v24 }
 0x492   : > { %v4775_v50 = vpop.eup %3947 }
 0x493   : > { %1779 = vadd.xlane.f32.xlu0 %v1778_v40  ;;  %v1772_v8 = vsel %vm1495_vm3, %v4775_v50, 0.0  ;;  %v4781_v27 = vpop.eup %3949 }
 0x494   : > { %1773 = vadd.xlane.f32.xlu1 %v1772_v8  ;;  %v1781_v54 = vsel %vm1495_vm3, %v4781_v27, 0.0 }
 0x495   : > { %v4783_v45 = vpop.eup %3951 }
 0x496   : > { %v1775_v20 = vsel %vm1495_vm3, %v4783_v45, 0.0 }
 0x497   : > { %1776 = vadd.xlane.f32.xlu0 %v1775_v20 }
 0x498   : > { %1782 = vadd.xlane.f32.xlu1 %v1781_v54 }
 0x4a9   : > { %2569 = vrot.lane.b32.xlu1 %v4293_v7, %s4071_s30 }
 0x4ad   : > { %2522 = vrot.lane.b32.xlu0 %v4309_v11, %s4071_s30  ;;  %s4072_s30 = smov 8  }
 0x4b4   : > { %v1690_v51 = vpop.xlane.xlu0 %1689 }
 0x4b5   : > { %3953 = vrcp.f32 %v1690_v51 }
 0x4b8   : > { %v1693_v13 = vpop.xlane.xlu1 %1692  ;;  %v1702_v63 = vpop.xlane.xlu0 %1701 }
 0x4b9   : > { %3955 = vrcp.f32 %v1693_v13 }
 0x4bc   : > { %v1705_v0 = vpop.xlane.xlu1 %1704  ;;  %v1696_v22 = vpop.xlane.xlu0 %1695 }
 0x4bd   : > { %3957 = vrcp.f32 %v1705_v0 }
 0x4be   : > { %3959 = vrcp.f32 %v1702_v63 }
 0x4bf   : > { %3961 = vrcp.f32 %v1696_v22 }
 0x4c0   : > { %v1699_v30 = vpop.xlane.xlu1 %1698  ;;  %v1708_v16 = vpop.xlane.xlu0 %1707 }
 0x4c1   : > { %3963 = vrcp.f32 %v1699_v30 }
 0x4c2   : > { %v3954_v7 = vpop.eup %3953 }
 0x4c3   : > { %v1816_v33 = vmul.f32 %v3954_v7, %v4637_v5 }
 0x4c4   : > { %v1711_v14 = vpop.xlane.xlu1 %1710 }
 0x4c5   : > { %3965 = vrcp.f32 %v1711_v14 }
 0x4c6   : > { %v3956_v11 = vpop.eup %3955  ;;  %3967 = vrcp.f32 %v1708_v16 }
 0x4c7   : > { %v1817_v34 = vmul.f32 %v3956_v11, %v4639_v53 }
 0x4c9   : > { %v1848_v26 = vpack.c.bf16 %v1817_v34, %v1816_v33 }
 0x4ca   : > { %v3958_v42 = vpop.eup %3957 }
 0x4cb   : > { %v3960_v24 = vpop.eup %3959  ;;  %3654 = vmatmul.mubr.msk.bf16.vlgmr.msra.gmra.mxu0 %vm1495_vm3, %v1848_v26  ;;  %v1821_v8 = vmul.f32 %v3958_v42, %v4645_v19 }
 0x4cc   : > { %v3962_v40 = vpop.eup %3961  ;;  %3664 = vmatpush3.bf16.msra.mxu0 %v4591_v12  ;;  %3665 = vmatprep.mubr.msk.bf16.mxu0 %vm4068_vm1, %v4067_v55  ;;  %v1820_v54 = vmul.f32 %v3960_v24, %v4643_v59 }
 0x4cd   : > { %3675 = vmatprep.subr.bf16.mxu0 %v4067_v55  ;;  %v1818_v5 = vmul.f32 %v3962_v40, %v4651_v62 }
 0x4ce   : > { %v3964_v20 = vpop.eup %3963  ;;  %v1850_v13 = vpack.c.bf16 %v1821_v8, %v1820_v54 }
 0x4cf   : > { %v1819_v53 = vmul.f32 %v3964_v20, %v4653_v1 }
 0x4d1   : > { %v1849_v51 = vpack.c.bf16 %v1819_v53, %v1818_v5 }
 0x4d2   : > { %v3966_v63 = vpop.eup %3965 }
 0x4d3   : > { %3660 = vmatmul.mubr.msk.bf16.vlgmr.msra.gmra.mxu1 %vm1495_vm3, %v1849_v51  ;;  %3666 = vmatmul.mubr.msk.bf16.vlgmr.msra.gmra.mxu0 %vm1495_vm3, %v1850_v13  ;;  %v3968_v12 = vpop.eup %3967  ;;  %v1823_v19 = vmul.f32 %v3966_v63, %v4665_v25 }
 0x4d4   : > { %3670 = vmatpush3.bf16.msra.mxu1 %v4589_v9  ;;  %3676 = vmatpush3.bf16.msra.mxu0 %v4609_v29  ;;  %v1822_v59 = vmul.f32 %v3968_v12, %v4659_v17 }
 0x4d5   : > { %3671 = vmatprep.mubr.msk.bf16.mxu1 %vm4068_vm1, %v4067_v55  ;;  %3681 = vmatprep.subr.bf16.mxu1 %v4067_v55 }
 0x4d6   : > { %3677 = vmatprep.mubr.msk.bf16.mxu0 %vm4068_vm1, %v4067_v55  ;;  %3687 = vmatprep.subr.bf16.mxu0 %v4067_v55  ;;  %v1851_v62 = vpack.c.bf16 %v1823_v19, %v1822_v59 }
 0x4db   : > { %3672 = vmatmul.mubr.msk.bf16.vlgmr.msra.gmra.mxu1 %vm1495_vm3, %v1851_v62 }
 0x4dc   : > { %3682 = vmatpush3.bf16.msra.mxu1 %v4607_v37  ;;  %3683 = vmatprep.mubr.msk.bf16.mxu1 %vm4068_vm1, %v4067_v55 }
 0x4dd   : > { %3693 = vmatprep.subr.bf16.mxu1 %v4067_v55 }
 0x4ea   : > { %v1720_v9 = vpop.xlane.xlu0 %1719 }
 0x4eb   : > { %3969 = vrcp.f32 %v1720_v9 }
 0x4ee   : > { %v1723_v29 = vpop.xlane.xlu1 %1722 }
 0x4ef   : > { %3971 = vrcp.f32 %v1723_v29  ;;  %v1714_v1 = vpop.xlane.xlu0 %1713 }
 0x4f0   : > { %3973 = vrcp.f32 %v1714_v1 }
 0x4f2   : > { %v1717_v25 = vpop.xlane.xlu1 %1716 }
 0x4f3   : > { %3975 = vrcp.f32 %v1717_v25 }
 0x4f8   : > { %v1732_v0 = vpop.xlane.xlu0 %1731  ;;  %v3970_v17 = vpop.eup %3969 }
 0x4f9   : > { %3977 = vrcp.f32 %v1732_v0  ;;  %v1826_v7 = vmul.f32 %v3970_v17, %v4674_v6 }
 0x4fc   : > { %v3972_v22 = vpop.eup %3971  ;;  %v1735_v30 = vpop.xlane.xlu1 %1734 }
 0x4fd   : > { %3979 = vrcp.f32 %v1735_v30  ;;  %v1726_v37 = vpop.xlane.xlu0 %1725  ;;  %v1827_v16 = vmul.f32 %v3972_v22, %v4680_v2  ;;  %v3974_v14 = vpop.eup %3973 }
 0x4fe   : > { %3981 = vrcp.f32 %v1726_v37  ;;  %v1824_v26 = vmul.f32 %v3974_v14, %v4682_v32 }
 0x4ff   : > { %v1853_v11 = vpack.c.bf16 %v1827_v16, %v1826_v7 }
 0x500   : > { %v3976_v33 = vpop.eup %3975  ;;  %v1729_v34 = vpop.xlane.xlu1 %1728 }
 0x501   : > { %3983 = vrcp.f32 %v1729_v34  ;;  %3684 = vmatmul.mubr.msk.bf16.vlgmr.msra.gmra.mxu1 %vm1495_vm3, %v1853_v11  ;;  %v1825_v42 = vmul.f32 %v3976_v33, %v4690_v57  ;;  %v1744_v2 = vpop.xlane.xlu0 %1743 }
 0x502   : > { %3694 = vmatpush3.bf16.msra.mxu1 %v4613_v38  ;;  %3695 = vmatprep.mubr.msk.bf16.mxu1 %vm4068_vm1, %v4067_v55 }
 0x503   : > { %v1852_v6 = vpack.c.bf16 %v1825_v42, %v1824_v26  ;;  %3705 = vmatprep.subr.bf16.mxu1 %v4067_v55 }
 0x505   : > { %v1738_v24 = vpop.xlane.xlu1 %1737  ;;  %3678 = vmatmul.mubr.msk.bf16.vlgmr.msra.gmra.mxu0 %vm1495_vm3, %v1852_v6 }
 0x506   : > { %3688 = vmatpush3.bf16.msra.mxu0 %v4615_v43  ;;  %3689 = vmatprep.mubr.msk.bf16.mxu0 %vm4068_vm1, %v4067_v55  ;;  %3985 = vrcp.f32 %v1738_v24  ;;  %v3978_v32 = vpop.eup %3977 }
 0x507   : > { %3699 = vmatprep.subr.bf16.mxu0 %v4067_v55  ;;  %3987 = vrcp.f32 %v1744_v2  ;;  %v1830_v8 = vmul.f32 %v3978_v32, %v4698_v21 }
 0x508   : > { %v1741_v38 = vpop.xlane.xlu0 %1740 }
 0x509   : > { %v1747_v57 = vpop.xlane.xlu1 %1746  ;;  %3989 = vrcp.f32 %v1741_v38 }
 0x50a   : > { %v3980_v40 = vpop.eup %3979  ;;  %3991 = vrcp.f32 %v1747_v57 }
 0x50b   : > { %v1831_v20 = vmul.f32 %v3980_v40, %v4704_v48  ;;  %v3982_v5 = vpop.eup %3981 }
 0x50c   : > { %v1756_v53 = vpop.xlane.xlu0 %1755  ;;  %v1828_v13 = vmul.f32 %v3982_v5, %v4706_v56 }
 0x50d   : > { %v1750_v43 = vpop.xlane.xlu1 %1749  ;;  %v1855_v54 = vpack.c.bf16 %v1831_v20, %v1830_v8 }
 0x50e   : > { %v3984_v51 = vpop.eup %3983  ;;  %3993 = vrcp.f32 %v1750_v43 }
 0x50f   : > { %3696 = vmatmul.mubr.msk.bf16.vlgmr.msra.gmra.mxu1 %vm1495_vm3, %v1855_v54  ;;  %v1829_v63 = vmul.f32 %v3984_v51, %v4714_v36  ;;  %3995 = vrcp.f32 %v1756_v53 }
 0x510   : > { %3706 = vmatpush3.bf16.msra.mxu1 %v4617_v46  ;;  %v1753_v12 = vpop.xlane.xlu0 %1752  ;;  %3707 = vmatprep.mubr.msk.bf16.mxu1 %vm4068_vm1, %v4067_v55 }
 0x511   : > { %v1759_v21 = vpop.xlane.xlu1 %1758  ;;  %3997 = vrcp.f32 %v1753_v12  ;;  %v1854_v48 = vpack.c.bf16 %v1829_v63, %v1828_v13  ;;  %3717 = vmatprep.subr.bf16.mxu1 %v4067_v55 }
 0x512   : > { %3999 = vrcp.f32 %v1759_v21 }
 0x513   : > { %3690 = vmatmul.mubr.msk.bf16.vlgmr.msra.gmra.mxu0 %vm1495_vm3, %v1854_v48  ;;  %v3986_v19 = vpop.eup %3985 }
 0x514   : > { %3700 = vmatpush3.bf16.msra.mxu0 %v4619_v47  ;;  %v1768_v56 = vpop.xlane.xlu0 %1767  ;;  %3701 = vmatprep.mubr.msk.bf16.mxu0 %vm4068_vm1, %v4067_v55  ;;  %v3988_v46 = vpop.eup %3987  ;;  %v1832_v9 = vmul.f32 %v3986_v19, %v4724_v35 }
 0x515   : > { %v1762_v36 = vpop.xlane.xlu1 %1761  ;;  %3711 = vmatprep.subr.bf16.mxu0 %v4067_v55  ;;  %v1834_v25 = vmul.f32 %v3988_v46, %v4716_v41 }
 0x516   : > { %v3990_v59 = vpop.eup %3989  ;;  %4001 = vrcp.f32 %v1762_v36 }
 0x517   : > { %v3992_v62 = vpop.eup %3991  ;;  %v1833_v29 = vmul.f32 %v3990_v59, %v4732_v44  ;;  %4003 = vrcp.f32 %v1768_v56 }
 0x518   : > { %v1765_v1 = vpop.xlane.xlu0 %1764  ;;  %v1835_v47 = vmul.f32 %v3992_v62, %v4728_v28 }
 0x519   : > { %v1771_v0 = vpop.xlane.xlu1 %1770  ;;  %4005 = vrcp.f32 %v1765_v1  ;;  %v1856_v17 = vpack.c.bf16 %v1833_v29, %v1832_v9 }
 0x51a   : > { %4007 = vrcp.f32 %v1771_v0  ;;  %v1857_v22 = vpack.c.bf16 %v1835_v47, %v1834_v25 }
 0x51b   : > { %3702 = vmatmul.mubr.msk.bf16.vlgmr.msra.gmra.mxu0 %vm1495_vm3, %v1856_v17  ;;  %v3994_v30 = vpop.eup %3993 }
 0x51c   : > { %3708 = vmatmul.mubr.msk.bf16.vlgmr.msra.gmra.mxu1 %vm1495_vm3, %v1857_v22  ;;  %3712 = vmatpush3.bf16.msra.mxu0 %v4627_v58  ;;  %v1780_v35 = vpop.xlane.xlu0 %1779  ;;  %v3996_v44 = vpop.eup %3995  ;;  %v1836_v58 = vmul.f32 %v3994_v30, %v4742_v15 }
 0x51d   : > { %3718 = vmatpush3.bf16.msra.mxu1 %v4621_v52  ;;  %v1774_v37 = vpop.xlane.xlu1 %1773  ;;  %3713 = vmatprep.mubr.msk.bf16.mxu0 %vm4068_vm1, %v4067_v55  ;;  %v1838_v16 = vmul.f32 %v3996_v44, %v4736_v61 }
 0x51e   : > { %v3998_v41 = vpop.eup %3997  ;;  %3719 = vmatprep.mubr.msk.bf16.mxu1 %vm4068_vm1, %v4067_v55  ;;  %3723 = vmatprep.subr.bf16.mxu0 %v4067_v55  ;;  %4009 = vrcp.f32 %v1774_v37 }
 0x51f   : > { %v4000_v28 = vpop.eup %3999  ;;  %3729 = vmatprep.subr.bf16.mxu1 %v4067_v55  ;;  %v1837_v7 = vmul.f32 %v3998_v41, %v4751_v49  ;;  %4011 = vrcp.f32 %v1780_v35 }
 0x520   : > { %v1777_v52 = vpop.xlane.xlu0 %1776  ;;  %v1839_v14 = vmul.f32 %v4000_v28, %v4748_v31 }
 0x521   : > { %v1783_v11 = vpop.xlane.xlu1 %1782  ;;  %4013 = vrcp.f32 %v1777_v52  ;;  %v1858_v33 = vpack.c.bf16 %v1837_v7, %v1836_v58  ;;  %v3867_v7 = vld [vmem:[%s5139_s3 + $0x8] sm:$0xff]  }
 0x522   : > { %4015 = vrcp.f32 %v1783_v11  ;;  %v1859_v34 = vpack.c.bf16 %v1839_v14, %v1838_v16 }
 0x523   : > { %3714 = vmatmul.mubr.msk.bf16.vlgmr.msra.gmra.mxu0 %vm1495_vm3, %v1858_v33  ;;  %v4002_v26 = vpop.eup %4001 }
 0x524   : > { %3720 = vmatmul.mubr.msk.bf16.vlgmr.msra.gmra.mxu1 %vm1495_vm3, %v1859_v34  ;;  %3724 = vmatpush3.bf16.msra.mxu0 %v4793_v3  ;;  %v4004_v15 = vpop.eup %4003  ;;  %v1840_v49 = vmul.f32 %v4002_v26, %v4759_v60  ;;  %v2523_v24 = vpop.permute.xlu0 %2522 }
 0x525   : > { %3730 = vmatpush3.bf16.msra.mxu1 %v4795_v4  ;;  %3725 = vmatprep.mubr.msk.bf16.mxu0 %vm4068_vm1, %v4067_v55  ;;  %v1842_v3 = vmul.f32 %v4004_v15, %v4755_v23  ;;  %v2570_v38 = vpop.permute.xlu1 %2569 }
 0x526   : > { %v4006_v61 = vpop.eup %4005  ;;  %3731 = vmatprep.mubr.msk.bf16.mxu1 %vm4068_vm1, %v4067_v55  ;;  %3735 = vmatprep.subr.bf16.mxu0 %v4067_v55 }
 0x527   : > { %v4008_v31 = vpop.eup %4007  ;;  %3741 = vmatprep.subr.bf16.mxu1 %v4067_v55  ;;  %v1841_v42 = vmul.f32 %v4006_v61, %v4767_v18 }
 0x528   : > { %v1843_v4 = vmul.f32 %v4008_v31, %v4765_v10 }
 0x529   : > { %v1860_v6 = vpack.c.bf16 %v1841_v42, %v1840_v49 }
 0x52a   : > { %v1861_v2 = vpack.c.bf16 %v1843_v4, %v1842_v3 }
 0x52b   : > { %3726 = vmatmul.mubr.msk.bf16.vlgmr.msra.gmra.mxu0 %vm1495_vm3, %v1860_v6  ;;  %v4010_v32 = vpop.eup %4009 }
 0x52c   : > { %3732 = vmatmul.mubr.msk.bf16.vlgmr.msra.gmra.mxu1 %vm1495_vm3, %v1861_v2  ;;  %3736 = vmatpush3.bf16.msra.mxu0 %v2523_v24  ;;  %v4012_v57 = vpop.eup %4011  ;;  %v1844_v10 = vmul.f32 %v4010_v32, %v4775_v50  ;;  %v3868_v24 = vld [vmem:[%s5139_s3] sm:$0xff]  }
 0x52d   : > { %3742 = vmatpush3.bf16.msra.mxu1 %v2570_v38  ;;  %3737 = vmatprep.mubr.msk.bf16.mxu0 %vm4068_vm1, %v4067_v55  ;;  %v1846_v40 = vmul.f32 %v4012_v57, %v4771_v39 }
 0x52e   : > { %v4014_v60 = vpop.eup %4013  ;;  %3743 = vmatprep.mubr.msk.bf16.mxu1 %vm4068_vm1, %v4067_v55  ;;  %3747 = vmatprep.subr.bf16.mxu0 %v3867_v7 }
 0x52f   : > { %v4016_v23 = vpop.eup %4015  ;;  %v1845_v18 = vmul.f32 %v4014_v60, %v4783_v45 }
 0x530   : > { %v1847_v8 = vmul.f32 %v4016_v23, %v4781_v27 }
 0x531   : > { %v1862_v20 = vpack.c.bf16 %v1845_v18, %v1844_v10 }
 0x532   : > { %v1863_v5 = vpack.c.bf16 %v1847_v8, %v1846_v40 }
 0x533   : > { %3738 = vmatmul.mubr.msk.bf16.vlgmr.msra.gmra.mxu0 %vm1495_vm3, %v1862_v20 }
 0x534   : > { %3744 = vmatmul.mubr.msk.bf16.vlgmr.msra.gmra.mxu1 %vm1495_vm3, %v1863_v5  ;;  %3748 = vmatpush3.bf16.msra.mxu0 %v3867_v7 }
 0x535   : > { %3749 = vmatprep.subr.bf16.mxu0 %v3868_v24 }
 0x538   : > { %3750 = vmatpush3.bf16.msra.mxu0 %v3868_v24 }
 0x58b   : > { %v4897_v53 = vpop.f32.mrf.mxu0 }
 0x58d   : > { %v3655_v43 = vpop.f32.mrf.mxu0 }
 0x58f   : > { %v4899_v54 = vpop.f32.mrf.mxu0 }
 0x591   : > { %v3656_v55 = vpop.f32.mrf.mxu0 }
 0x593   : > { %v4901_v51 = vpop.f32.mrf.mxu1  ;;  %v4903_v50 = vpop.f32.mrf.mxu0 }
 0x595   : > { %v3661_v45 = vpop.f32.mrf.mxu1  ;;  %v3667_v39 = vpop.f32.mrf.mxu0 }
 0x597   : > { %v4905_v13 = vpop.f32.mrf.mxu1  ;;  %v4907_v27 = vpop.f32.mrf.mxu0 }
 0x599   : > { %v3662_v63 = vpop.f32.mrf.mxu1  ;;  %v3668_v12 = vpop.f32.mrf.mxu0 }
 0x59b   : > { %v4909_v21 = vpop.f32.mrf.mxu1 }
 0x59d   : > { %v3673_v48 = vpop.f32.mrf.mxu1 }
 0x59f   : > { %v4911_v19 = vpop.f32.mrf.mxu1 }
 0x5a1   : > { %v3674_v56 = vpop.f32.mrf.mxu1 }
 0x5c1   : > { %v2139_v46 = vpop.f32.mrf.mxu1 }
 0x5c3   : > { %v3685_v36 = vpop.f32.mrf.mxu1 }
 0x5c5   : > { %v2092_v59 = vpop.f32.mrf.mxu0  ;;  %v2142_v62 = vpop.f32.mrf.mxu1 }
 0x5c6   : > { %v3805_v9 = vpack.i.bf16 %v2142_v62, %v2139_v46 }
 0x5c7   : > { %v3679_v29 = vpop.f32.mrf.mxu0  ;;  %v3686_v1 = vpop.f32.mrf.mxu1 }
 0x5c8   : > { %3806 = vrot.lane.b32.xlu1 %v3805_v9, %s4072_s30 }
 0x5c9   : > { %v2095_v25 = vpop.f32.mrf.mxu0 }
 0x5ca   : > { %v3810_v47 = vpack.i.bf16 %v2095_v25, %v2092_v59 }
 0x5cb   : > { %v3680_v0 = vpop.f32.mrf.mxu0 }
 0x5cc   : > { %3811 = vrot.lane.b32.xlu0 %v3810_v47, %s4072_s30 }
 0x5cf   : > { %v2233_v17 = vpop.f32.mrf.mxu1 }
 0x5d1   : > { %v3697_v22 = vpop.f32.mrf.mxu1 }
 0x5d3   : > { %v2186_v30 = vpop.f32.mrf.mxu0  ;;  %v2236_v35 = vpop.f32.mrf.mxu1 }
 0x5d4   : > { %v3815_v44 = vpack.i.bf16 %v2236_v35, %v2233_v17 }
 0x5d5   : > { %v3691_v37 = vpop.f32.mrf.mxu0  ;;  %v3698_v41 = vpop.f32.mrf.mxu1 }
 0x5d6   : > { %3816 = vrot.lane.b32.xlu1 %v3815_v44, %s4072_s30 }
 0x5d7   : > { %v2189_v28 = vpop.f32.mrf.mxu0 }
 0x5d8   : > { %v3820_v58 = vpack.i.bf16 %v2189_v28, %v2186_v30 }
 0x5d9   : > { %v3692_v52 = vpop.f32.mrf.mxu0 }
 0x5da   : > { %3821 = vrot.lane.b32.xlu0 %v3820_v58, %s4072_s30 }
 0x5db   : > { %v2280_v16 = vpop.f32.mrf.mxu0 }
 0x5dc   : > { %v2327_v14 = vpop.f32.mrf.mxu1 }
 0x5dd   : > { %v3703_v11 = vpop.f32.mrf.mxu0 }
 0x5de   : > { %v3709_v33 = vpop.f32.mrf.mxu1 }
 0x5df   : > { %v2283_v34 = vpop.f32.mrf.mxu0 }
 0x5e0   : > { %v3830_v26 = vpack.i.bf16 %v2283_v34, %v2280_v16  ;;  %v2330_v15 = vpop.f32.mrf.mxu1 }
 0x5e1   : > { %v3825_v61 = vpack.i.bf16 %v2330_v15, %v2327_v14  ;;  %v3704_v31 = vpop.f32.mrf.mxu0 }
 0x5e2   : > { %v3710_v49 = vpop.f32.mrf.mxu1  ;;  %3831 = vrot.lane.b32.xlu0 %v3830_v26, %s4073_s18 }
 0x5e3   : > { %3826 = vrot.lane.b32.xlu1 %v3825_v61, %s4073_s18  ;;  %v2374_v42 = vpop.f32.mrf.mxu0 }
 0x5e4   : > { %v2421_v3 = vpop.f32.mrf.mxu1 }
 0x5e5   : > { %v3715_v4 = vpop.f32.mrf.mxu0 }
 0x5e6   : > { %v3721_v6 = vpop.f32.mrf.mxu1 }
 0x5e7   : > { %v2377_v2 = vpop.f32.mrf.mxu0 }
 0x5e8   : > { %v2424_v32 = vpop.f32.mrf.mxu1  ;;  %v3845_v39 = vpack.i.bf16 %v2377_v2, %v2374_v42 }
 0x5e9   : > { %v3716_v38 = vpop.f32.mrf.mxu0  ;;  %v3850_v12 = vpack.i.bf16 %v2424_v32, %v2421_v3 }
 0x5ea   : > { %v3722_v57 = vpop.f32.mrf.mxu1 }
 0x5eb   : > { %v2468_v60 = vpop.f32.mrf.mxu0 }
 0x5ec   : > { %v2515_v23 = vpop.f32.mrf.mxu1 }
 0x5ed   : > { %v3727_v10 = vpop.f32.mrf.mxu0 }
 0x5ee   : > { %v3733_v18 = vpop.f32.mrf.mxu1 }
 0x5ef   : > { %v2471_v40 = vpop.f32.mrf.mxu0 }
 0x5f0   : > { %v3840_v8 = vpack.i.bf16 %v2471_v40, %v2468_v60  ;;  %v2518_v20 = vpop.f32.mrf.mxu1 }
 0x5f1   : > { %v3835_v5 = vpack.i.bf16 %v2518_v20, %v2515_v23  ;;  %v3728_v43 = vpop.f32.mrf.mxu0 }
 0x5f2   : > { %v3734_v55 = vpop.f32.mrf.mxu1  ;;  %3841 = vrot.lane.b32.xlu0 %v3840_v8, %s4074_s22 }
 0x5f3   : > { %3836 = vrot.lane.b32.xlu1 %v3835_v5, %s4074_s22  ;;  %v2562_v45 = vpop.f32.mrf.mxu0 }
 0x5f4   : > { %v2609_v63 = vpop.f32.mrf.mxu1 }
 0x5f5   : > { %v3739_v48 = vpop.f32.mrf.mxu0 }
 0x5f6   : > { %v3745_v56 = vpop.f32.mrf.mxu1  ;;  %3846 = vrot.lane.b32.xlu0 %v3845_v39, %s4073_s18 }
 0x5f7   : > { %3851 = vrot.lane.b32.xlu1 %v3850_v12, %s4073_s18  ;;  %v2565_v46 = vpop.f32.mrf.mxu0 }
 0x5f8   : > { %v3855_v36 = vpack.i.bf16 %v2565_v46, %v2562_v45  ;;  %v2612_v59 = vpop.f32.mrf.mxu1 }
 0x5f9   : > { %v3860_v62 = vpack.i.bf16 %v2612_v59, %v2609_v63  ;;  %v3740_v9 = vpop.f32.mrf.mxu0 }
 0x5fa   : > { %v3746_v29 = vpop.f32.mrf.mxu1  ;;  %3856 = vrot.lane.b32.xlu0 %v3855_v36, %s4074_s22 }
 0x5fb   : > { %3861 = vrot.lane.b32.xlu1 %v3860_v62, %s4074_s22  ;;  %s361_s22 = scalar_lea.vmem %s5146_s10, %s3311_s16 }
 0x63a   : > { %v3807_v25 = vpop.permute.xlu1 %3806 }
 0x63b   : > { %v3809_v22 = vunpack.i.h.bf16 %v3807_v25  ;;  %v3808_v30 = vunpack.i.l.bf16 %v3807_v25  ;;  %v3353_v25 = vld [vmem:[%s5140_s4] ss:$0 sm:$0xff] }
 0x63d   : > { %v2715_v52 = vsel %vm616_vm2, %v4905_v13, %v3809_v22  ;;  %v2714_v16 = vsel %vm616_vm2, %v4901_v51, %v3808_v30  ;;  %v4049_v30 = vld [vmem:[%s4146_s19] sm:$0xff] }
 0x63e   : > { %v3812_v1 = vpop.permute.xlu0 %3811 }
 0x63f   : > { %v3814_v35 = vunpack.i.h.bf16 %v3812_v1  ;;  %v3813_v37 = vunpack.i.l.bf16 %v3812_v1 }
 0x641   : > { %v2713_v14 = vsel %vm616_vm2, %v4899_v54, %v3814_v35  ;;  %v2712_v33 = vsel %vm616_vm2, %v4897_v53, %v3813_v37  ;;  %v4050_v37 = vld [vmem:[%s4146_s19 + $0x10] sm:$0xff] }
 0x648   : > { %v3817_v0 = vpop.permute.xlu1 %3816 }
 0x649   : > { %v3819_v34 = vunpack.i.h.bf16 %v3817_v0  ;;  %v3818_v6 = vunpack.i.l.bf16 %v3817_v0 }
 0x64b   : > { %v2719_v20 = vsel %vm616_vm2, %v4911_v19, %v3819_v34  ;;  %v2718_v5 = vsel %vm616_vm2, %v4909_v21, %v3818_v6  ;;  %v4054_v6 = vld [vmem:[%s4146_s19 + $0x28] sm:$0xff] }
 0x64c   : > { %v3822_v47 = vpop.permute.xlu0 %3821 }
 0x64d   : > { %v3824_v38 = vunpack.i.h.bf16 %v3822_v47  ;;  %v3823_v57 = vunpack.i.l.bf16 %v3822_v47 }
 0x64f   : > { %v2717_v55 = vsel %vm616_vm2, %v4907_v27, %v3824_v38  ;;  %v2716_v45 = vsel %vm616_vm2, %v4903_v50, %v3823_v57 }
 0x654   : > { %v3832_v17 = vpop.permute.xlu0 %3831 }
 0x655   : > { %v3827_v44 = vpop.permute.xlu1 %3826  ;;  %v3834_v41 = vunpack.i.h.bf16 %v3832_v17  ;;  %v3833_v28 = vunpack.i.l.bf16 %v3832_v17 }
 0x656   : > { %v3829_v58 = vunpack.i.h.bf16 %v3827_v44  ;;  %v3828_v7 = vunpack.i.l.bf16 %v3827_v44 }
 0x657   : > { %v2720_v31 = vsel %vm1495_vm3, %v2712_v33, %v3833_v28  ;;  %v2721_v49 = vsel %vm1495_vm3, %v2713_v14, %v3834_v41  ;;  %v4052_v33 = vld [vmem:[%s4146_s19 + $0x18] sm:$0xff] }
 0x658   : > { %v2723_v51 = vsel %vm1495_vm3, %v2715_v52, %v3829_v58  ;;  %v2722_v3 = vsel %vm1495_vm3, %v2714_v16, %v3828_v7  ;;  %v4051_v16 = vld [vmem:[%s4146_s19 + $0x8] sm:$0xff] }
 0x664   : > { %v3842_v11 = vpop.permute.xlu0 %3841 }
 0x665   : > { %v3837_v26 = vpop.permute.xlu1 %3836  ;;  %v3844_v15 = vunpack.i.h.bf16 %v3842_v11  ;;  %v3843_v61 = vunpack.i.l.bf16 %v3842_v11 }
 0x666   : > { %v3839_v13 = vunpack.i.h.bf16 %v3837_v26  ;;  %v3838_v42 = vunpack.i.l.bf16 %v3837_v26 }
 0x667   : > { %v2729_v54 = vsel %vm2728_vm4, %v2720_v31, %v3843_v61  ;;  %v2730_v4 = vsel %vm2728_vm4, %v2721_v49, %v3844_v15 }
 0x668   : > { %v2732_v53 = vsel %vm2728_vm4, %v2723_v51, %v3839_v13  ;;  %v2731_v2 = vsel %vm2728_vm4, %v2722_v3, %v3838_v42  ;;  %v2737_v24 = vpack.c.bf16 %v2730_v4, %v2729_v54  ;;  %v3847_v32 = vpop.permute.xlu0 %3846  ;;  %v4053_v42 = vld [vmem:[%s4146_s19 + $0x20] sm:$0xff] }
 0x669   : > { %v2738_v60 = vpack.c.bf16 %v2732_v53, %v2731_v2  ;;  %v3852_v23 = vpop.permute.xlu1 %3851  ;;  %v3849_v10 = vunpack.i.h.bf16 %v3847_v32  ;;  %v3848_v18 = vunpack.i.l.bf16 %v3847_v32  ;;  %v4055_v2 = vld [vmem:[%s4146_s19 + $0x30] sm:$0xff]  ;;  %v4056_v32 = vld [vmem:[%s4146_s19 + $0x38] sm:$0xff] }
 0x66a   : > { %3751 = vmatprep.mubr.msk.bf16.mxu0 %vm372_vm0, %v2737_v24  ;;  %v3854_v40 = vunpack.i.h.bf16 %v3852_v23  ;;  %v3853_v8 = vunpack.i.l.bf16 %v3852_v23 }
 0x66b   : > { %3752 = vmatmul.mubr.msk.bf16.vlgmr.msra.gmra.mxu0 %vm372_vm0, %v2738_v60  ;;  %v2724_v48 = vsel %vm1495_vm3, %v2716_v45, %v3848_v18  ;;  %v2725_v56 = vsel %vm1495_vm3, %v2717_v55, %v3849_v10 }
 0x66c   : > { %v3857_v43 = vpop.permute.xlu0 %3856  ;;  %v2727_v19 = vsel %vm1495_vm3, %v2719_v20, %v3854_v40  ;;  %v2726_v21 = vsel %vm1495_vm3, %v2718_v5, %v3853_v8 }
 0x66d   : > { %v3862_v39 = vpop.permute.xlu1 %3861  ;;  %v3859_v63 = vunpack.i.h.bf16 %v3857_v43  ;;  %v3858_v12 = vunpack.i.l.bf16 %v3857_v43 }
 0x66e   : > { %v3864_v46 = vunpack.i.h.bf16 %v3862_v39  ;;  %v3863_v36 = vunpack.i.l.bf16 %v3862_v39 }
 0x66f   : > { %v2733_v59 = vsel %vm2728_vm4, %v2724_v48, %v3858_v12  ;;  %v2734_v27 = vsel %vm2728_vm4, %v2725_v56, %v3859_v63 }
 0x670   : > { %v2736_v50 = vsel %vm2728_vm4, %v2727_v19, %v3864_v46  ;;  %v2735_v62 = vsel %vm2728_vm4, %v2726_v21, %v3863_v36  ;;  %v2739_v9 = vpack.c.bf16 %v2734_v27, %v2733_v59 }
 0x671   : > { %v2740_v29 = vpack.c.bf16 %v2736_v50, %v2735_v62 }
 0x672   : > { %3755 = vmatprep.mubr.msk.bf16.mxu0 %vm372_vm0, %v2739_v9 }
 0x673   : > { %3756 = vmatmul.mubr.msk.bf16.gmra.mxu0 %vm372_vm0, %v2740_v29 }
 0x72b   : > { %v3753_v1 = vpop.f32.mrf.mxu0 }
 0x72c   : > { %v2819_v0 = vadd.f32 %v3753_v1, %v3353_v25 }
 0x72d   : > { %v2810_v47 = vpop.f32.mrf.mxu0 }
 0x72e   : > { %v2811_v17 = vadd.f32 %v3353_v25, %v2810_v47  ;;  %v4966_v41 = vadd.f32 %v4050_v37, %v2819_v0 }
 0x72f   : > { %v3754_v22 = vpop.f32.mrf.mxu0 }
 0x730   : > { %v4963_v35 = vadd.f32 %v4049_v30, %v2811_v17  ;;  %v2822_v28 = vadd.f32 %v3754_v22, %v3353_v25  ;;  %v2855_v61 = vsel %vm372_vm0, %v4966_v41, 0.0 }
 0x731   : > { %v2813_v44 = vpop.f32.mrf.mxu0 }
 0x732   : > { %v2814_v58 = vadd.f32 %v3353_v25, %v2813_v44  ;;  %v2849_v7 = vsel %vm372_vm0, %v4963_v35, 0.0  ;;  %v4974_v34 = vadd.f32 %v4052_v33, %v2822_v28 }
 0x733   : > { %v3757_v52 = vpop.f32.mrf.mxu0  ;;  %2850 = vadd.xlane.f32.xlu0 %v2849_v7 }
 0x734   : > { %v4971_v14 = vadd.f32 %v4051_v16, %v2814_v58  ;;  %v2835_v49 = vadd.f32 %v3757_v52, %v3353_v25  ;;  %v2858_v4 = vsel %vm372_vm0, %v4974_v34, 0.0 }
 0x735   : > { %v2826_v11 = vpop.f32.mrf.mxu0 }
 0x736   : > { %v2827_v26 = vadd.f32 %v3353_v25, %v2826_v11  ;;  %v2852_v15 = vsel %vm372_vm0, %v4971_v14, 0.0  ;;  %v4989_v24 = vadd.f32 %v4055_v2, %v2835_v49 }
 0x737   : > { %v3758_v31 = vpop.f32.mrf.mxu0  ;;  %2853 = vadd.xlane.f32.xlu1 %v2852_v15  ;;  %2856 = vadd.xlane.f32.xlu0 %v2855_v61  ;;  %v3869_v15 = vld [vmem:[%s5142_s6 + $0x8] sm:$0xff]   ;;  %v3870_v61 = vld [vmem:[%s5142_s6] sm:$0xff]  }
 0x738   : > { %v4981_v51 = vadd.f32 %v4053_v42, %v2827_v26  ;;  %v2838_v3 = vadd.f32 %v3758_v31, %v3353_v25  ;;  %v2867_v10 = vsel %vm372_vm0, %v4989_v24, 0.0  ;;  %3759 = vmatprep.subr.bf16.mxu1 %v3869_v15 }
 0x739   : > { %v2829_v13 = vpop.f32.mrf.mxu0  ;;  %3760 = vmatpush3.bf16.msra.mxu1 %v3869_v15 }
 0x73a   : > { %v2830_v54 = vadd.f32 %v3353_v25, %v2829_v13  ;;  %v4992_v38 = vadd.f32 %v4056_v32, %v2838_v3  ;;  %v2861_v60 = vsel %vm372_vm0, %v4981_v51, 0.0  ;;  %3761 = vmatprep.subr.bf16.mxu1 %v3870_v61 }
 0x73b   : > { %2859 = vadd.xlane.f32.xlu0 %v2858_v4 }
 0x73c   : > { %v4986_v53 = vadd.f32 %v4054_v6, %v2830_v54  ;;  %v2870_v23 = vsel %vm372_vm0, %v4992_v38, 0.0 }
 0x73d   : > { %3762 = vmatpush3.bf16.msra.mxu1 %v3870_v61 }
 0x73e   : > { %v2864_v57 = vsel %vm372_vm0, %v4986_v53, 0.0 }
 0x73f   : > { %2865 = vadd.xlane.f32.xlu1 %v2864_v57  ;;  %2862 = vadd.xlane.f32.xlu0 %v2861_v60 }
 0x743   : > { %2871 = vadd.xlane.f32.xlu1 %v2870_v23  ;;  %2868 = vadd.xlane.f32.xlu0 %v2867_v10 }
 0x7bc   : > { %v2851_v18 = vpop.xlane.xlu0 %2850 }
 0x7bd   : > { %v2873_v40 = vmul.f32 0.03125, %v2851_v18 }
 0x7bf   : > { %v5003_v8 = vsub.f32 %v4963_v35, %v2873_v40 }
 0x7c0   : > { %v2854_v20 = vpop.xlane.xlu1 %2853  ;;  %v2857_v5 = vpop.xlane.xlu0 %2856 }
 0x7c1   : > { %v2874_v43 = vmul.f32 0.03125, %v2854_v20  ;;  %v2875_v55 = vmul.f32 0.03125, %v2857_v5  ;;  %v2889_v45 = vmul.f32 %v5003_v8, %v5003_v8 }
 0x7c3   : > { %v5008_v39 = vsub.f32 %v4971_v14, %v2874_v43  ;;  %v5011_v63 = vsub.f32 %v4966_v41, %v2875_v55  ;;  %v2897_v12 = vsel %vm372_vm0, %v2889_v45, 0.0 }
 0x7c4   : > { %2898 = vadd.xlane.f32.xlu0 %v2897_v12  ;;  %v2860_v48 = vpop.xlane.xlu0 %2859 }
 0x7c5   : > { %v2876_v56 = vmul.f32 0.03125, %v2860_v48  ;;  %v2890_v46 = vmul.f32 %v5008_v39, %v5008_v39  ;;  %v2891_v36 = vmul.f32 %v5011_v63, %v5011_v63 }
 0x7c7   : > { %v5019_v19 = vsub.f32 %v4974_v34, %v2876_v56  ;;  %v2900_v21 = vsel %vm372_vm0, %v2890_v46, 0.0  ;;  %v2903_v59 = vsel %vm372_vm0, %v2891_v36, 0.0 }
 0x7c8   : > { %2901 = vadd.xlane.f32.xlu1 %v2900_v21  ;;  %v2866_v27 = vpop.xlane.xlu1 %2865  ;;  %2904 = vadd.xlane.f32.xlu0 %v2903_v59  ;;  %v2863_v50 = vpop.xlane.xlu0 %2862 }
 0x7c9   : > { %v2878_v62 = vmul.f32 0.03125, %v2866_v27  ;;  %v2877_v9 = vmul.f32 0.03125, %v2863_v50  ;;  %v2892_v29 = vmul.f32 %v5019_v19, %v5019_v19 }
 0x7cb   : > { %v5026_v1 = vsub.f32 %v4986_v53, %v2878_v62  ;;  %v5029_v25 = vsub.f32 %v4981_v51, %v2877_v9  ;;  %v2906_v47 = vsel %vm372_vm0, %v2892_v29, 0.0 }
 0x7cc   : > { %v2872_v0 = vpop.xlane.xlu1 %2871  ;;  %2907 = vadd.xlane.f32.xlu1 %v2906_v47  ;;  %v2869_v17 = vpop.xlane.xlu0 %2868 }
 0x7cd   : > { %v2880_v22 = vmul.f32 0.03125, %v2872_v0  ;;  %v2879_v30 = vmul.f32 0.03125, %v2869_v17  ;;  %v2894_v44 = vmul.f32 %v5026_v1, %v5026_v1  ;;  %v2893_v37 = vmul.f32 %v5029_v25, %v5029_v25 }
 0x7cf   : > { %v5037_v28 = vsub.f32 %v4992_v38, %v2880_v22  ;;  %v5040_v58 = vsub.f32 %v4989_v24, %v2879_v30  ;;  %v2912_v7 = vsel %vm372_vm0, %v2894_v44, 0.0  ;;  %v2909_v52 = vsel %vm372_vm0, %v2893_v37, 0.0 }
 0x7d0   : > { %2913 = vadd.xlane.f32.xlu1 %v2912_v7  ;;  %2910 = vadd.xlane.f32.xlu0 %v2909_v52 }
 0x7d1   : > { %v2896_v16 = vmul.f32 %v5037_v28, %v5037_v28  ;;  %v2895_v11 = vmul.f32 %v5040_v58, %v5040_v58 }
 0x7d3   : > { %v2918_v33 = vsel %vm372_vm0, %v2896_v16, 0.0  ;;  %v2915_v26 = vsel %vm372_vm0, %v2895_v11, 0.0 }
 0x7d4   : > { %2919 = vadd.xlane.f32.xlu1 %v2918_v33  ;;  %2916 = vadd.xlane.f32.xlu0 %v2915_v26 }
 0x84d   : > { %v2899_v31 = vpop.xlane.xlu0 %2898 }
 0x84e   : > { %v2921_v49 = vmul.f32 0.03125, %v2899_v31 }
 0x850   : > { %v2929_v13 = vadd.f32 1e-05, %v2921_v49 }
 0x851   : > { %v2902_v42 = vpop.xlane.xlu1 %2901  ;;  %v2905_v3 = vpop.xlane.xlu0 %2904 }
 0x852   : > { %v2922_v54 = vmul.f32 0.03125, %v2902_v42  ;;  %v2923_v4 = vmul.f32 0.03125, %v2905_v3  ;;  %4017 = vrsqrt.f32 %v2929_v13 }
 0x854   : > { %v2930_v6 = vadd.f32 1e-05, %v2922_v54  ;;  %v2931_v2 = vadd.f32 1e-05, %v2923_v4 }
 0x855   : > { %v2908_v32 = vpop.xlane.xlu1 %2907 }
 0x856   : > { %4019 = vrsqrt.f32 %v2930_v6  ;;  %v2924_v57 = vmul.f32 0.03125, %v2908_v32 }
 0x857   : > { %4021 = vrsqrt.f32 %v2931_v2 }
 0x858   : > { %v2932_v60 = vadd.f32 1e-05, %v2924_v57 }
 0x859   : > { %v2914_v23 = vpop.xlane.xlu1 %2913  ;;  %v2911_v10 = vpop.xlane.xlu0 %2910 }
 0x85a   : > { %4023 = vrsqrt.f32 %v2932_v60  ;;  %v2926_v18 = vmul.f32 0.03125, %v2914_v23  ;;  %v2925_v40 = vmul.f32 0.03125, %v2911_v10 }
 0x85c   : > { %v2934_v20 = vadd.f32 1e-05, %v2926_v18  ;;  %v2933_v5 = vadd.f32 1e-05, %v2925_v40 }
 0x85d   : > { %v2920_v43 = vpop.xlane.xlu1 %2919  ;;  %v2917_v55 = vpop.xlane.xlu0 %2916 }
 0x85e   : > { %4025 = vrsqrt.f32 %v2934_v20  ;;  %v2928_v45 = vmul.f32 0.03125, %v2920_v43  ;;  %v2927_v12 = vmul.f32 0.03125, %v2917_v55 }
 0x85f   : > { %4027 = vrsqrt.f32 %v2933_v5  ;;  %v4018_v46 = vpop.eup %4017 }
 0x860   : > { %v2936_v48 = vadd.f32 1e-05, %v2928_v45  ;;  %v2935_v56 = vadd.f32 1e-05, %v2927_v12  ;;  %v2945_v21 = vmul.f32 %v4018_v46, %v5003_v8 }
 0x862   : > { %4029 = vrsqrt.f32 %v2936_v48 }
 0x863   : > { %v4020_v36 = vpop.eup %4019  ;;  %4031 = vrsqrt.f32 %v2935_v56 }
 0x864   : > { %v2946_v59 = vmul.f32 %v4020_v36, %v5008_v39  ;;  %v4022_v27 = vpop.eup %4021 }
 0x865   : > { %v2947_v9 = vmul.f32 %v4022_v27, %v5011_v63 }
 0x866   : > { %v2953_v50 = vpack.c.bf16 %v2946_v59, %v2945_v21 }
 0x867   : > { %v4024_v62 = vpop.eup %4023 }
 0x868   : > { %3763 = vmatprep.mubr.msk.bf16.mxu1 %vm372_vm0, %v2953_v50  ;;  %v2948_v29 = vmul.f32 %v4024_v62, %v5019_v19  ;;  %v3871_v19 = vld [vmem:[%s5144_s8 + $0x8] sm:$0xff]  }
 0x869   : > { %3771 = vmatprep.subr.bf16.mxu0 %v3871_v19 }
 0x86a   : > { %v2954_v47 = vpack.c.bf16 %v2948_v29, %v2947_v9  ;;  %3772 = vmatpush3.bf16.msra.mxu0 %v3871_v19 }
 0x86b   : > { %v4026_v0 = vpop.eup %4025 }
 0x86c   : > { %v4028_v17 = vpop.eup %4027  ;;  %3764 = vmatmul.mubr.msk.bf16.vlgmr.msra.gmra.mxu1 %vm372_vm0, %v2954_v47  ;;  %v2950_v22 = vmul.f32 %v4026_v0, %v5026_v1  ;;  %v3872_v1 = vld [vmem:[%s5144_s8] sm:$0xff]  }
 0x86d   : > { %v2949_v8 = vmul.f32 %v4028_v17, %v5029_v25  ;;  %3773 = vmatprep.subr.bf16.mxu0 %v3872_v1  ;;  %v3360_v25 = vld [vmem:[%s5143_s7] ss:$0 sm:$0xff] }
 0x86e   : > { %3774 = vmatpush3.bf16.msra.mxu0 %v3872_v1 }
 0x86f   : > { %v4030_v30 = vpop.eup %4029  ;;  %v2955_v39 = vpack.c.bf16 %v2950_v22, %v2949_v8 }
 0x870   : > { %v4032_v44 = vpop.eup %4031  ;;  %v2952_v37 = vmul.f32 %v4030_v30, %v5037_v28 }
 0x871   : > { %3767 = vmatprep.mubr.msk.bf16.mxu1 %vm372_vm0, %v2955_v39  ;;  %v2951_v63 = vmul.f32 %v4032_v44, %v5040_v58 }
 0x873   : > { %v2956_v7 = vpack.c.bf16 %v2952_v37, %v2951_v63 }
 0x875   : > { %3768 = vmatmul.mubr.msk.bf16.gmra.mxu1 %vm372_vm0, %v2956_v7 }
 0x92c   : > { %v3765_v28 = vpop.f32.mrf.mxu1 }
 0x92d   : > { %v5077_v58 = vadd.f32 %v3765_v28, %v3360_v25 }
 0x92e   : > { %v3026_v52 = vpop.f32.mrf.mxu1 }
 0x92f   : > { %v3067_v16 = vmul.f32 0.044715, %v5077_v58  ;;  %v5080_v11 = vadd.f32 %v3360_v25, %v3026_v52 }
 0x930   : > { %v3766_v33 = vpop.f32.mrf.mxu1 }
 0x931   : > { %v3075_v26 = vmul.f32 %v3067_v16, %v5077_v58  ;;  %v3065_v15 = vmul.f32 0.044715, %v5080_v11  ;;  %v3038_v61 = vadd.f32 %v3766_v33, %v3360_v25 }
 0x932   : > { %v3029_v31 = vpop.f32.mrf.mxu1 }
 0x933   : > { %v3083_v49 = vmul.f32 %v3075_v26, %v5077_v58  ;;  %v3073_v13 = vmul.f32 %v3065_v15, %v5080_v11  ;;  %v3068_v42 = vmul.f32 0.044715, %v3038_v61  ;;  %v3030_v3 = vadd.f32 %v3360_v25, %v3029_v31 }
 0x935   : > { %v3091_v54 = vadd.f32 %v3083_v49, %v5077_v58  ;;  %v3081_v4 = vmul.f32 %v3073_v13, %v5080_v11  ;;  %v3076_v6 = vmul.f32 %v3068_v42, %v3038_v61  ;;  %v3769_v2 = vpop.f32.mrf.mxu1  ;;  %v3066_v32 = vmul.f32 0.044715, %v3030_v3 }
 0x936   : > { %v5088_v57 = vadd.f32 %v3769_v2, %v3360_v25  ;;  %v3060_v49 = vmul.f32 0.5, %v3038_v61  ;;  %v3057_v13 = vmul.f32 0.5, %v5080_v11  ;;  %v3058_v42 = vmul.f32 0.5, %v3030_v3 }
 0x937   : > { %v3099_v60 = vmul.f32 0.7978846, %v3091_v54  ;;  %v3089_v23 = vadd.f32 %v3081_v4, %v5080_v11  ;;  %v3084_v10 = vmul.f32 %v3076_v6, %v3038_v61  ;;  %v3042_v18 = vpop.f32.mrf.mxu1  ;;  %v3074_v40 = vmul.f32 %v3066_v32, %v3030_v3 }
 0x938   : > { %v3071_v20 = vmul.f32 0.044715, %v5088_v57  ;;  %v5092_v5 = vadd.f32 %v3360_v25, %v3042_v18  ;;  %v3059_v4 = vmul.f32 0.5, %v5077_v58 }
 0x939   : > { %4033 = vtanh.f32 %v3099_v60  ;;  %v3097_v43 = vmul.f32 0.7978846, %v3089_v23  ;;  %v3092_v55 = vadd.f32 %v3084_v10, %v3038_v61  ;;  %v3770_v45 = vpop.f32.mrf.mxu1  ;;  %v3082_v12 = vmul.f32 %v3074_v40, %v3030_v3 }
 0x93a   : > { %v3079_v48 = vmul.f32 %v3071_v20, %v5088_v57  ;;  %v3069_v56 = vmul.f32 0.044715, %v5092_v5  ;;  %v3054_v46 = vadd.f32 %v3770_v45, %v3360_v25  ;;  %v3061_v58 = vmul.f32 0.5, %v5092_v5 }
 0x93b   : > { %4035 = vtanh.f32 %v3097_v43  ;;  %v3100_v36 = vmul.f32 0.7978846, %v3092_v55  ;;  %v3045_v21 = vpop.f32.mrf.mxu1  ;;  %v3090_v59 = vadd.f32 %v3082_v12, %v3030_v3 }
 0x93c   : > { %v3087_v27 = vmul.f32 %v3079_v48, %v5088_v57  ;;  %v3077_v50 = vmul.f32 %v3069_v56, %v5092_v5  ;;  %v3072_v62 = vmul.f32 0.044715, %v3054_v46  ;;  %v3046_v9 = vadd.f32 %v3360_v25, %v3045_v21 }
 0x93d   : > { %4037 = vtanh.f32 %v3100_v36  ;;  %v3098_v29 = vmul.f32 0.7978846, %v3090_v59  ;;  %v3064_v3 = vmul.f32 0.5, %v3054_v46  ;;  %v3063_v48 = vmul.f32 0.5, %v5088_v57 }
 0x93e   : > { %v3095_v47 = vadd.f32 %v3087_v27, %v5088_v57  ;;  %v3085_v0 = vmul.f32 %v3077_v50, %v5092_v5  ;;  %v3080_v17 = vmul.f32 %v3072_v62, %v3054_v46  ;;  %v3070_v22 = vmul.f32 0.044715, %v3046_v9 }
 0x93f   : > { %4039 = vtanh.f32 %v3098_v29  ;;  %v3062_v45 = vmul.f32 0.5, %v3046_v9 }
 0x940   : > { %v3103_v8 = vmul.f32 0.7978846, %v3095_v47  ;;  %v3093_v30 = vadd.f32 %v3085_v0, %v5092_v5  ;;  %v3088_v39 = vmul.f32 %v3080_v17, %v3054_v46  ;;  %v3078_v44 = vmul.f32 %v3070_v22, %v3046_v9 }
 0x942   : > { %v3101_v37 = vmul.f32 0.7978846, %v3093_v30  ;;  %v3096_v63 = vadd.f32 %v3088_v39, %v3054_v46  ;;  %v3086_v7 = vmul.f32 %v3078_v44, %v3046_v9  ;;  %4041 = vtanh.f32 %v3103_v8  ;;  %v3367_v46 = vld [vmem:[%s5145_s9] ss:$0 sm:$0xff] }
 0x944   : > { %v3104_v19 = vmul.f32 0.7978846, %v3096_v63  ;;  %4043 = vtanh.f32 %v3101_v37  ;;  %v3094_v1 = vadd.f32 %v3086_v7, %v3046_v9 }
 0x946   : > { %v4034_v25 = vpop.eup %4033  ;;  %4045 = vtanh.f32 %v3104_v19  ;;  %v3102_v28 = vmul.f32 0.7978846, %v3094_v1 }
 0x947   : > { %v3115_v31 = vadd.f32 1.0, %v4034_v25 }
 0x948   : > { %v4036_v52 = vpop.eup %4035  ;;  %4047 = vtanh.f32 %v3102_v28 }
 0x949   : > { %v3113_v26 = vadd.f32 1.0, %v4036_v52  ;;  %v3123_v23 = vmul.f32 %v3115_v31, %v3059_v4 }
 0x94a   : > { %v4038_v16 = vpop.eup %4037 }
 0x94b   : > { %v3116_v33 = vadd.f32 1.0, %v4038_v16  ;;  %v3121_v2 = vmul.f32 %v3113_v26, %v3057_v13 }
 0x94c   : > { %v4040_v15 = vpop.eup %4039 }
 0x94d   : > { %v3114_v54 = vadd.f32 1.0, %v4040_v15  ;;  %v3124_v6 = vmul.f32 %v3116_v33, %v3060_v49 }
 0x94f   : > { %v3122_v32 = vmul.f32 %v3114_v54, %v3058_v42  ;;  %v4042_v60 = vpop.eup %4041  ;;  %v3130_v20 = vpack.c.bf16 %v3124_v6, %v3123_v23 }
 0x950   : > { %v3119_v55 = vadd.f32 1.0, %v4042_v60 }
 0x951   : > { %v4044_v10 = vpop.eup %4043  ;;  %v3129_v18 = vpack.c.bf16 %v3122_v32, %v3121_v2 }
 0x952   : > { %v3117_v61 = vadd.f32 1.0, %v4044_v10  ;;  %v3127_v59 = vmul.f32 %v3119_v55, %v3063_v48 }
 0x953   : > { %v4046_v40 = vpop.eup %4045  ;;  %3775 = vmatprep.mubr.msk.bf16.mxu0 %vm372_vm0, %v3129_v18 }
 0x954   : > { %v3120_v43 = vadd.f32 1.0, %v4046_v40  ;;  %3776 = vmatmul.mubr.msk.bf16.vlgmr.msra.gmra.mxu0 %vm372_vm0, %v3130_v20  ;;  %v3125_v36 = vmul.f32 %v3117_v61, %v3061_v58 }
 0x955   : > { %v4048_v11 = vpop.eup %4047 }
 0x956   : > { %v3118_v12 = vadd.f32 1.0, %v4048_v11  ;;  %v3128_v56 = vmul.f32 %v3120_v43, %v3064_v3 }
 0x958   : > { %v3126_v21 = vmul.f32 %v3118_v12, %v3062_v45  ;;  %v3132_v50 = vpack.c.bf16 %v3128_v56, %v3127_v59 }
 0x95a   : > { %v3131_v27 = vpack.c.bf16 %v3126_v21, %v3125_v36 }
 0x95c   : > { %3779 = vmatprep.mubr.msk.bf16.mxu0 %vm372_vm0, %v3131_v27 }
 0x95d   : > { %3780 = vmatmul.mubr.msk.bf16.gmra.mxu0 %vm372_vm0, %v3132_v50 }
 0xa14   : > { %v3777_v62 = vpop.f32.mrf.mxu0 }
 0xa15   : > { %v3211_v5 = vadd.f32 %v3777_v62, %v3367_v46 }
 0xa16   : > { %v3202_v57 = vpop.f32.mrf.mxu0 }
 0xa17   : > { %v3235_v9 = vadd.f32 %v3211_v5, %v4966_v41  ;;  %v3203_v29 = vadd.f32 %v3367_v46, %v3202_v57 }
 0xa18   : > { %v3778_v47 = vpop.f32.mrf.mxu0 }
 0xa19   : > { %3243 = vst.msk [vmem:[%s361_s22 + $0x10] sm:$0xff] %vm372_vm0, %v3235_v9  ;;  %v3233_v0 = vadd.f32 %v3203_v29, %v4963_v35  ;;  %v3214_v17 = vadd.f32 %v3778_v47, %v3367_v46 }
 0xa1a   : > { %v3205_v22 = vpop.f32.mrf.mxu0 }
 0xa1b   : > { %3241 = vst.msk [vmem:[%s361_s22] sm:$0xff] %vm372_vm0, %v3233_v0  ;;  %v3236_v8 = vadd.f32 %v3214_v17, %v4974_v34  ;;  %v3206_v30 = vadd.f32 %v3367_v46, %v3205_v22 }
 0xa1d   : > { %3244 = vst.msk [vmem:[%s361_s22 + $0x18] sm:$0xff] %vm372_vm0, %v3236_v8  ;;  %v3234_v39 = vadd.f32 %v3206_v30, %v4971_v14  ;;  %v3781_v44 = vpop.f32.mrf.mxu0 }
 0xa1e   : > { %v3227_v37 = vadd.f32 %v3781_v44, %v3367_v46 }
 0xa1f   : > { %3242 = vst.msk [vmem:[%s361_s22 + $0x8] sm:$0xff] %vm372_vm0, %v3234_v39  ;;  %v3218_v41 = vpop.f32.mrf.mxu0 }
 0xa20   : > { %v3239_v63 = vadd.f32 %v3227_v37, %v4989_v24  ;;  %v3219_v7 = vadd.f32 %v3367_v46, %v3218_v41 }
 0xa21   : > { %v3782_v35 = vpop.f32.mrf.mxu0 }
 0xa22   : > { %3247 = vst.msk [vmem:[%s361_s22 + $0x30] sm:$0xff] %vm372_vm0, %v3239_v63  ;;  %v3237_v19 = vadd.f32 %v3219_v7, %v4981_v51  ;;  %v3230_v1 = vadd.f32 %v3782_v35, %v3367_v46 }
 0xa23   : > { %v3221_v34 = vpop.f32.mrf.mxu0 }
 0xa24   : > { %3245 = vst.msk [vmem:[%s361_s22 + $0x20] sm:$0xff] %vm372_vm0, %v3237_v19  ;;  %v3240_v25 = vadd.f32 %v3230_v1, %v4992_v38  ;;  %v3222_v14 = vadd.f32 %v3367_v46, %v3221_v34 }
 0xa26   : > { %3248 = vst.msk [vmem:[%s361_s22 + $0x38] sm:$0xff] %vm372_vm0, %v3240_v25  ;;  %v3238_v28 = vadd.f32 %v3222_v14, %v4986_v53 }
 0xa28   : > { %3246 = vst.msk [vmem:[%s361_s22 + $0x28] sm:$0xff] %vm372_vm0, %v3238_v28 }
 0xa29 PF: > { %s20_s13 = sadd.s32 1, %s4063_s13  }
 0xa2a   : > { %p17_p4 = scmp.ge.s32.totalorder %s20_s13, 4  }
 0xa2c   :  { %19 = sbr.rel (!%p17_p4) target bundleno = 1 (0x1), region = 90 }

</bundles_post_ra>
